<compile_context>
chip_gen: v5e
topology: v5e:2x2
jax: 0.10.0
libtpu: 0.0.40
codegen_flags: <defaults>
</compile_context>

<pallas_src>
import functools

import jax
import jax.numpy as jnp
from jax.experimental import pallas as pl
from jax.experimental.pallas import tpu as pltpu

# ---------------- configuration (matches FairEquiGenerator.__init__) ---------
EMB_SIZE = 16
EXTENT_SIZE = 8
HIDDEN_SIZE = 16
NUM_LAYERS = 1                       # kernel implements the default num_layers=1
NUM_ATT_HEADS = 2                    # MultiHeadAttention(num_heads=2)
KEY_SIZE = NUM_LAYERS * HIDDEN_SIZE * 2           # 32
LSTM_INPUT_SIZE = EXTENT_SIZE + 2 + 2 * HIDDEN_SIZE  # 42
DAN_LAYERS = [128, 128, 128, 64, 64, 64, EXTENT_SIZE]
DAN_PAD = 128                        # padded width of the DAN weight slab


def _full_spec(shape):
    """BlockSpec covering the whole array as a single VMEM block (grid=(1,))."""
    return pl.BlockSpec(shape, lambda i: (0,) * len(shape))


# ---------------- parameter init (deterministic, synthetic) ------------------
def _kaiming(key, shape, fan_in):
    return jax.random.normal(key, shape, jnp.float32) * jnp.sqrt(2.0 / fan_in)


def init_params(key):
    H = HIDDEN_SIZE
    keys = jax.random.split(key, 8)
    ki = iter(keys)
    params = {}

    # attrnodes_dan MLP packed into one padded (L,128,128) slab (bf16 for MXU).
    n_l = len(DAN_LAYERS)
    dan_w = jnp.zeros((n_l, DAN_PAD, DAN_PAD), jnp.float32)
    dan_b = jnp.zeros((n_l, 1, DAN_PAD), jnp.float32)
    in_f = EMB_SIZE + 10
    wkeys = jax.random.split(next(ki), n_l)
    for k, out_f in enumerate(DAN_LAYERS):
        w = _kaiming(wkeys[k], (in_f, out_f), in_f)     # stored transposed (in, out)
        dan_w = dan_w.at[k, :in_f, :out_f].set(w)
        in_f = out_f
    params["dan_w"] = dan_w.astype(jnp.bfloat16)        # bf16 inputs, f32 accumulation
    params["dan_b"] = dan_b

    # LSTM: one fused (LSTM_IN + H, 4H) slab, PyTorch gate order [i, f, g, o].
    w_ih = _kaiming(next(ki), (4 * H, LSTM_INPUT_SIZE), LSTM_INPUT_SIZE)
    w_hh = _kaiming(next(ki), (4 * H, H), H)
    b_lstm = jax.random.normal(next(ki), (4 * H,), jnp.float32) * 0.01

    # PyTorch flattens the attention output (value, head)-interleaved
    # (out.transpose(1,2).view(B, 2H)); the kernel feeds contiguous
    # [head0 | head1] blocks, so de-interleave the first 2H input columns of
    # W_ih (pure relabelling of the synthetic weights).
    perm = jnp.concatenate([
        jnp.arange(H) * 2,
        jnp.arange(H) * 2 + 1,
        2 * H + jnp.arange(LSTM_INPUT_SIZE - 2 * H),
    ])
    w_ih = w_ih[:, perm]
    # slab rows: [s_att (2H) | a_summary (extent+2) | h (H)], cols: 4H gates
    params["w_lstm"] = jnp.concatenate(
        [jnp.transpose(w_ih), jnp.transpose(w_hh)], axis=0)       # (58, 64)
    params["b_lstm"] = b_lstm.reshape(1, 4 * H)

    # self_attention: fused query heads, cols [head0 | head1].
    wq = _kaiming(next(ki), (NUM_ATT_HEADS * H, KEY_SIZE), KEY_SIZE)
    bq = jax.random.normal(next(ki), (NUM_ATT_HEADS * H,), jnp.float32) * 0.01
    wv = _kaiming(next(ki), (H, H), H)
    bv = jax.random.normal(next(ki), (H,), jnp.float32) * 0.01
    params["wq"] = jnp.transpose(wq)                  # (key_size, 2H)
    params["bq"] = bq.reshape(1, NUM_ATT_HEADS * H)
    params["wv"] = jnp.transpose(wv)                  # (H, H)
    params["bv"] = bv.reshape(1, H)
    return params


# ---------------- the fused kernel --------------------------------------------
def _fair_equi_kernel(node_emb_ref, attrs_ref, pred_ref,
                      dan_w_ref, dan_b_ref,
                      w_lstm_ref, b_lstm_ref,
                      wq_ref, bq_ref, wv_ref, bv_ref,
                      out_ref, *, max_fc):
    f32 = jnp.float32
    H = HIDDEN_SIZE
    B = out_ref.shape[0]

    # ---- attrnodes_dan: mean-pool + 7x(Linear+ReLU) + Sigmoid -----------------
    # mean(concat) == concat(means): avoids materializing (B, N, 26) in HBM.
    reduced = jnp.concatenate(
        [jnp.mean(node_emb_ref[...], axis=1), jnp.mean(attrs_ref[...], axis=1)],
        axis=-1)                                                    # (B, emb+10)
    x = jnp.concatenate(
        [reduced, jnp.zeros((B, DAN_PAD - reduced.shape[-1]), f32)], axis=-1)
    for k in range(len(DAN_LAYERS)):
        w = dan_w_ref[k]                                            # (128,128) bf16
        b = dan_b_ref[k]                                            # (1,128) f32
        x = jnp.maximum(
            jnp.dot(x.astype(jnp.bfloat16), w, preferred_element_type=f32) + b, 0.0)
    a_dan = jax.nn.sigmoid(x[:, :EXTENT_SIZE])                      # (B, extent)

    pred = pred_ref[...]                                            # (B, 1)
    w_lstm = w_lstm_ref[...]
    b_lstm = b_lstm_ref[...]
    wq = wq_ref[...]
    bq = bq_ref[...]
    wv = wv_ref[...]
    bv = bv_ref[...]

    def softmax_lanes(lg):           # softmax over the sequence (lane) axis
        m = jnp.max(lg, axis=-1, keepdims=True)
        e = jnp.exp(lg - m)
        inv = pl.reciprocal(jnp.sum(e, axis=-1, keepdims=True), approx=True)
        return e * inv

    h = jnp.zeros((B, H), f32)
    c = jnp.zeros((B, H), f32)
    s0 = jnp.zeros((B, H), f32)       # s_attention head 0
    s1 = jnp.zeros((B, H), f32)       # s_attention head 1
    projs = []                        # cached value projections of previous outputs
    outs = []

    # TODO(synk): statically unrolled; for large max_fc switch to lax.fori_loop
    # with a pltpu.VMEM((max_fc, B, H)) scratch for the cached projections.
    for i in range(max_fc):
        if i > 0:
            # sigmoid-weighted 2-head self-attention over previous LSTM outputs.
            key = jnp.concatenate([h, c], axis=-1)                  # (B, 2H)
            q = jnp.dot(key, wq, preferred_element_type=f32) + bq   # (B, 2H) fused heads
            q0, q1 = q[:, :H], q[:, H:]
            p_stack = jnp.concatenate([p[:, None, :] for p in projs], axis=1)  # (B,i,H)
            lg0 = jax.nn.sigmoid(jnp.sum(p_stack * q0[:, None, :], axis=-1))   # (B,i)
            lg1 = jax.nn.sigmoid(jnp.sum(p_stack * q1[:, None, :], axis=-1))
            a0 = softmax_lanes(lg0)
            a1 = softmax_lanes(lg1)
            s0 = jnp.sum(a0[:, :, None] * p_stack, axis=1)          # (B, H)
            s1 = jnp.sum(a1[:, :, None] * p_stack, axis=1)

        # a_summary row i = [step index, predicted_fconcept_number, dan summary]
        a_sum_i = jnp.concatenate(
            [jnp.full((B, 1), float(i), f32), pred, a_dan], axis=-1)  # (B, extent+2)

        # single fused LSTM-cell matmul: [s0|s1|a_sum|h] @ (58, 4H)
        xh = jnp.concatenate([s0, s1, a_sum_i, h], axis=-1)         # (B, 58)
        gates = jnp.dot(xh, w_lstm, preferred_element_type=f32) + b_lstm  # (B, 4H)
        sig = jax.nn.sigmoid(gates)                                 # one 64-lane EUP pass
        i_g = sig[:, 0 * H:1 * H]
        f_g = sig[:, 1 * H:2 * H]
        g_g = jnp.tanh(gates[:, 2 * H:3 * H])
        o_g = sig[:, 3 * H:4 * H]
        c = f_g * c + i_g * g_g
        h = o_g * jnp.tanh(c)

        # cache this step's value projection for later attention steps.
        projs.append(jnp.dot(h, wv, preferred_element_type=f32) + bv)
        # lstm_output: Sigmoid.  TODO(synk): the reference also indexes
        # self.lstm_output[1] / [2] (which do not exist) and tuple-unpacks a
        # tensor; implemented as the single Sigmoid the Sequential holds.
        outs.append(jax.nn.sigmoid(h))

    # one lane-dense store of the whole (B, max_fc*H) result.
    out_ref[...] = jnp.concatenate(outs, axis=-1)


# ---------------- full forward -------------------------------------------------
def fair_equi_generator_forward(params, node_emb, predicted_fconcept_number, attrs,
                                max_fconcept_number):
    # TODO(synk): the reference default `predicted_fconcept_number.max()[0]` is
    # ill-formed (indexes a 0-d tensor); max_fconcept_number must be a static int.
    B, max_node, _ = node_emb.shape
    pred = predicted_fconcept_number.astype(jnp.float32).reshape(B, 1)

    inputs = [node_emb, attrs, pred,
              params["dan_w"], params["dan_b"],
              params["w_lstm"], params["b_lstm"],
              params["wq"], params["bq"], params["wv"], params["bv"]]

    kernel = functools.partial(_fair_equi_kernel, max_fc=max_fconcept_number)
    flat = pl.pallas_call(
        kernel,
        out_shape=jax.ShapeDtypeStruct((B, max_fconcept_number * HIDDEN_SIZE),
                                       jnp.float32),
        grid=(1,),
        in_specs=[_full_spec(x.shape) for x in inputs],
        out_specs=_full_spec((B, max_fconcept_number * HIDDEN_SIZE)),
        compiler_params=pltpu.CompilerParams(dimension_semantics=("arbitrary",)),
    )(*inputs)

    # torch.cat(results, dim=-1).permute(0, 2, 1): each step's output is
    # identical for every node, so the node repeat is a pure broadcast.
    return jnp.broadcast_to(
        flat[:, :, None], (B, max_fconcept_number * HIDDEN_SIZE, max_node))


# ---------------- demo ----------------------------------------------------------
if __name__ == "__main__":
    key = jax.random.PRNGKey(0)
    k_param, k_node, k_attr = jax.random.split(key, 3)
    params = init_params(k_param)

    B, max_node, max_fc = 2, 8, 4
    node_emb = jax.random.normal(k_node, (B, max_node, EMB_SIZE), jnp.float32)
    attrs = jax.random.normal(k_attr, (B, max_node, 10), jnp.float32)
    predicted_fconcept_number = jnp.array([4.0, 3.0], dtype=jnp.float32)

    out = fair_equi_generator_forward(params, node_emb, predicted_fconcept_number,
                                      attrs, max_fc)
    out = jax.block_until_ready(out)
    assert out.shape == (B, max_fc * HIDDEN_SIZE, max_node), out.shape
    assert bool(jnp.all(jnp.isfinite(out)))
    print("KERNEL_OK")
</pallas_src>

<mosaic_0001>
module attributes {stable_mosaic.version = 11 : i64} {
  func.func @_fair_equi_kernel(%arg0: i32, %arg1: memref<2x8x16xf32, #tpu.memory_space<vmem>>, %arg2: memref<2x8x10xf32, #tpu.memory_space<vmem>>, %arg3: memref<2x1xf32, #tpu.memory_space<vmem>>, %arg4: memref<7x128x128xbf16, #tpu.memory_space<vmem>>, %arg5: memref<7x1x128xf32, #tpu.memory_space<vmem>>, %arg6: memref<58x64xf32, #tpu.memory_space<vmem>>, %arg7: memref<1x64xf32, #tpu.memory_space<vmem>>, %arg8: memref<32x32xf32, #tpu.memory_space<vmem>>, %arg9: memref<1x32xf32, #tpu.memory_space<vmem>>, %arg10: memref<16x16xf32, #tpu.memory_space<vmem>>, %arg11: memref<1x16xf32, #tpu.memory_space<vmem>>, %arg12: memref<2x64xf32, #tpu.memory_space<vmem>>) attributes {dimension_semantics = [#tpu.dimension_semantics<arbitrary>], iteration_bounds = array<i64: 1>, scalar_prefetch = 0 : i64, scratch_operands = 0 : i64, tpu.core_type = #tpu.core_type<tc>, window_params = [{pipeline_mode = #tpu.pipeline_mode<synchronous>, transform_indices = @transform_0, window_bounds = array<i64: 2, 8, 16>}, {pipeline_mode = #tpu.pipeline_mode<synchronous>, transform_indices = @transform_1, window_bounds = array<i64: 2, 8, 10>}, {pipeline_mode = #tpu.pipeline_mode<synchronous>, transform_indices = @transform_2, window_bounds = array<i64: 2, 1>}, {pipeline_mode = #tpu.pipeline_mode<synchronous>, transform_indices = @transform_3, window_bounds = array<i64: 7, 128, 128>}, {pipeline_mode = #tpu.pipeline_mode<synchronous>, transform_indices = @transform_4, window_bounds = array<i64: 7, 1, 128>}, {pipeline_mode = #tpu.pipeline_mode<synchronous>, transform_indices = @transform_5, window_bounds = array<i64: 58, 64>}, {pipeline_mode = #tpu.pipeline_mode<synchronous>, transform_indices = @transform_6, window_bounds = array<i64: 1, 64>}, {pipeline_mode = #tpu.pipeline_mode<synchronous>, transform_indices = @transform_7, window_bounds = array<i64: 32, 32>}, {pipeline_mode = #tpu.pipeline_mode<synchronous>, transform_indices = @transform_8, window_bounds = array<i64: 1, 32>}, {pipeline_mode = #tpu.pipeline_mode<synchronous>, transform_indices = @transform_9, window_bounds = array<i64: 16, 16>}, {pipeline_mode = #tpu.pipeline_mode<synchronous>, transform_indices = @transform_10, window_bounds = array<i64: 1, 16>}, {pipeline_mode = #tpu.pipeline_mode<synchronous>, transform_indices = @transform_11, window_bounds = array<i64: 2, 64>}]} {
    %c0 = arith.constant 0 : index
    %c0_0 = arith.constant 0 : index
    %c0_1 = arith.constant 0 : index
    %0 = vector.load %arg1[%c0, %c0_0, %c0_1] : memref<2x8x16xf32, #tpu.memory_space<vmem>>, vector<2x8x16xf32>
    %cst = arith.constant dense<0.000000e+00> : vector<2x16xf32>
    %1 = vector.multi_reduction <add>, %0, %cst [1] : vector<2x8x16xf32> to vector<2x16xf32>
    %cst_2 = arith.constant 8.000000e+00 : f32
    %2 = vector.broadcast %cst_2 : f32 to vector<2x16xf32>
    %3 = arith.divf %1, %2 : vector<2x16xf32>
    %c0_3 = arith.constant 0 : index
    %c0_4 = arith.constant 0 : index
    %c0_5 = arith.constant 0 : index
    %4 = vector.load %arg2[%c0_3, %c0_4, %c0_5] : memref<2x8x10xf32, #tpu.memory_space<vmem>>, vector<2x8x10xf32>
    %cst_6 = arith.constant dense<0.000000e+00> : vector<2x10xf32>
    %5 = vector.multi_reduction <add>, %4, %cst_6 [1] : vector<2x8x10xf32> to vector<2x10xf32>
    %cst_7 = arith.constant 8.000000e+00 : f32
    %6 = vector.broadcast %cst_7 : f32 to vector<2x10xf32>
    %7 = arith.divf %5, %6 : vector<2x10xf32>
    %8 = tpu.concatenate %3, %7 in 1 : vector<2x16xf32>, vector<2x10xf32> -> vector<2x26xf32>
    %cst_8 = arith.constant 0.000000e+00 : f32
    %9 = vector.broadcast %cst_8 : f32 to vector<2x102xf32>
    %10 = tpu.concatenate %8, %9 in 1 : vector<2x26xf32>, vector<2x102xf32> -> vector<2x128xf32>
    %c0_9 = arith.constant 0 : index
    %c0_10 = arith.constant 0 : index
    %c0_11 = arith.constant 0 : index
    %11 = vector.load %arg4[%c0_9, %c0_10, %c0_11] : memref<7x128x128xbf16, #tpu.memory_space<vmem>>, vector<1x128x128xbf16>
    %12 = vector.shape_cast %11 : vector<1x128x128xbf16> to vector<128x128xbf16>
    %c0_12 = arith.constant 0 : index
    %c0_13 = arith.constant 0 : index
    %c0_14 = arith.constant 0 : index
    %13 = vector.load %arg5[%c0_12, %c0_13, %c0_14] : memref<7x1x128xf32, #tpu.memory_space<vmem>>, vector<1x1x128xf32>
    %14 = vector.shape_cast %13 : vector<1x1x128xf32> to vector<1x128xf32>
    %15 = arith.truncf %10 : vector<2x128xf32> to vector<2x128xbf16>
    %cst_15 = arith.constant dense<0.000000e+00> : vector<2x128xf32>
    %16 = tpu.matmul %15, %12, %cst_15 {dimension_numbers = #tpu.dot_dimension_numbers<[1], [0], [0], [1], [0, 0, 1, 1], [], []>} : vector<2x128xbf16>, vector<128x128xbf16>, vector<2x128xf32> -> vector<2x128xf32>
    %17 = vector.broadcast %14 : vector<1x128xf32> to vector<2x128xf32>
    %18 = arith.addf %16, %17 : vector<2x128xf32>
    %cst_16 = arith.constant 0.000000e+00 : f32
    %19 = vector.broadcast %cst_16 : f32 to vector<2x128xf32>
    %20 = arith.maximumf %18, %19 : vector<2x128xf32>
    %c1 = arith.constant 1 : index
    %c0_17 = arith.constant 0 : index
    %c0_18 = arith.constant 0 : index
    %21 = vector.load %arg4[%c1, %c0_17, %c0_18] : memref<7x128x128xbf16, #tpu.memory_space<vmem>>, vector<1x128x128xbf16>
    %22 = vector.shape_cast %21 : vector<1x128x128xbf16> to vector<128x128xbf16>
    %c1_19 = arith.constant 1 : index
    %c0_20 = arith.constant 0 : index
    %c0_21 = arith.constant 0 : index
    %23 = vector.load %arg5[%c1_19, %c0_20, %c0_21] : memref<7x1x128xf32, #tpu.memory_space<vmem>>, vector<1x1x128xf32>
    %24 = vector.shape_cast %23 : vector<1x1x128xf32> to vector<1x128xf32>
    %25 = arith.truncf %20 : vector<2x128xf32> to vector<2x128xbf16>
    %cst_22 = arith.constant dense<0.000000e+00> : vector<2x128xf32>
    %26 = tpu.matmul %25, %22, %cst_22 {dimension_numbers = #tpu.dot_dimension_numbers<[1], [0], [0], [1], [0, 0, 1, 1], [], []>} : vector<2x128xbf16>, vector<128x128xbf16>, vector<2x128xf32> -> vector<2x128xf32>
    %27 = vector.broadcast %24 : vector<1x128xf32> to vector<2x128xf32>
    %28 = arith.addf %26, %27 : vector<2x128xf32>
    %cst_23 = arith.constant 0.000000e+00 : f32
    %29 = vector.broadcast %cst_23 : f32 to vector<2x128xf32>
    %30 = arith.maximumf %28, %29 : vector<2x128xf32>
    %c2 = arith.constant 2 : index
    %c0_24 = arith.constant 0 : index
    %c0_25 = arith.constant 0 : index
    %31 = vector.load %arg4[%c2, %c0_24, %c0_25] : memref<7x128x128xbf16, #tpu.memory_space<vmem>>, vector<1x128x128xbf16>
    %32 = vector.shape_cast %31 : vector<1x128x128xbf16> to vector<128x128xbf16>
    %c2_26 = arith.constant 2 : index
    %c0_27 = arith.constant 0 : index
    %c0_28 = arith.constant 0 : index
    %33 = vector.load %arg5[%c2_26, %c0_27, %c0_28] : memref<7x1x128xf32, #tpu.memory_space<vmem>>, vector<1x1x128xf32>
    %34 = vector.shape_cast %33 : vector<1x1x128xf32> to vector<1x128xf32>
    %35 = arith.truncf %30 : vector<2x128xf32> to vector<2x128xbf16>
    %cst_29 = arith.constant dense<0.000000e+00> : vector<2x128xf32>
    %36 = tpu.matmul %35, %32, %cst_29 {dimension_numbers = #tpu.dot_dimension_numbers<[1], [0], [0], [1], [0, 0, 1, 1], [], []>} : vector<2x128xbf16>, vector<128x128xbf16>, vector<2x128xf32> -> vector<2x128xf32>
    %37 = vector.broadcast %34 : vector<1x128xf32> to vector<2x128xf32>
    %38 = arith.addf %36, %37 : vector<2x128xf32>
    %cst_30 = arith.constant 0.000000e+00 : f32
    %39 = vector.broadcast %cst_30 : f32 to vector<2x128xf32>
    %40 = arith.maximumf %38, %39 : vector<2x128xf32>
    %c3 = arith.constant 3 : index
    %c0_31 = arith.constant 0 : index
    %c0_32 = arith.constant 0 : index
    %41 = vector.load %arg4[%c3, %c0_31, %c0_32] : memref<7x128x128xbf16, #tpu.memory_space<vmem>>, vector<1x128x128xbf16>
    %42 = vector.shape_cast %41 : vector<1x128x128xbf16> to vector<128x128xbf16>
    %c3_33 = arith.constant 3 : index
    %c0_34 = arith.constant 0 : index
    %c0_35 = arith.constant 0 : index
    %43 = vector.load %arg5[%c3_33, %c0_34, %c0_35] : memref<7x1x128xf32, #tpu.memory_space<vmem>>, vector<1x1x128xf32>
    %44 = vector.shape_cast %43 : vector<1x1x128xf32> to vector<1x128xf32>
    %45 = arith.truncf %40 : vector<2x128xf32> to vector<2x128xbf16>
    %cst_36 = arith.constant dense<0.000000e+00> : vector<2x128xf32>
    %46 = tpu.matmul %45, %42, %cst_36 {dimension_numbers = #tpu.dot_dimension_numbers<[1], [0], [0], [1], [0, 0, 1, 1], [], []>} : vector<2x128xbf16>, vector<128x128xbf16>, vector<2x128xf32> -> vector<2x128xf32>
    %47 = vector.broadcast %44 : vector<1x128xf32> to vector<2x128xf32>
    %48 = arith.addf %46, %47 : vector<2x128xf32>
    %cst_37 = arith.constant 0.000000e+00 : f32
    %49 = vector.broadcast %cst_37 : f32 to vector<2x128xf32>
    %50 = arith.maximumf %48, %49 : vector<2x128xf32>
    %c4 = arith.constant 4 : index
    %c0_38 = arith.constant 0 : index
    %c0_39 = arith.constant 0 : index
    %51 = vector.load %arg4[%c4, %c0_38, %c0_39] : memref<7x128x128xbf16, #tpu.memory_space<vmem>>, vector<1x128x128xbf16>
    %52 = vector.shape_cast %51 : vector<1x128x128xbf16> to vector<128x128xbf16>
    %c4_40 = arith.constant 4 : index
    %c0_41 = arith.constant 0 : index
    %c0_42 = arith.constant 0 : index
    %53 = vector.load %arg5[%c4_40, %c0_41, %c0_42] : memref<7x1x128xf32, #tpu.memory_space<vmem>>, vector<1x1x128xf32>
    %54 = vector.shape_cast %53 : vector<1x1x128xf32> to vector<1x128xf32>
    %55 = arith.truncf %50 : vector<2x128xf32> to vector<2x128xbf16>
    %cst_43 = arith.constant dense<0.000000e+00> : vector<2x128xf32>
    %56 = tpu.matmul %55, %52, %cst_43 {dimension_numbers = #tpu.dot_dimension_numbers<[1], [0], [0], [1], [0, 0, 1, 1], [], []>} : vector<2x128xbf16>, vector<128x128xbf16>, vector<2x128xf32> -> vector<2x128xf32>
    %57 = vector.broadcast %54 : vector<1x128xf32> to vector<2x128xf32>
    %58 = arith.addf %56, %57 : vector<2x128xf32>
    %cst_44 = arith.constant 0.000000e+00 : f32
    %59 = vector.broadcast %cst_44 : f32 to vector<2x128xf32>
    %60 = arith.maximumf %58, %59 : vector<2x128xf32>
    %c5 = arith.constant 5 : index
    %c0_45 = arith.constant 0 : index
    %c0_46 = arith.constant 0 : index
    %61 = vector.load %arg4[%c5, %c0_45, %c0_46] : memref<7x128x128xbf16, #tpu.memory_space<vmem>>, vector<1x128x128xbf16>
    %62 = vector.shape_cast %61 : vector<1x128x128xbf16> to vector<128x128xbf16>
    %c5_47 = arith.constant 5 : index
    %c0_48 = arith.constant 0 : index
    %c0_49 = arith.constant 0 : index
    %63 = vector.load %arg5[%c5_47, %c0_48, %c0_49] : memref<7x1x128xf32, #tpu.memory_space<vmem>>, vector<1x1x128xf32>
    %64 = vector.shape_cast %63 : vector<1x1x128xf32> to vector<1x128xf32>
    %65 = arith.truncf %60 : vector<2x128xf32> to vector<2x128xbf16>
    %cst_50 = arith.constant dense<0.000000e+00> : vector<2x128xf32>
    %66 = tpu.matmul %65, %62, %cst_50 {dimension_numbers = #tpu.dot_dimension_numbers<[1], [0], [0], [1], [0, 0, 1, 1], [], []>} : vector<2x128xbf16>, vector<128x128xbf16>, vector<2x128xf32> -> vector<2x128xf32>
    %67 = vector.broadcast %64 : vector<1x128xf32> to vector<2x128xf32>
    %68 = arith.addf %66, %67 : vector<2x128xf32>
    %cst_51 = arith.constant 0.000000e+00 : f32
    %69 = vector.broadcast %cst_51 : f32 to vector<2x128xf32>
    %70 = arith.maximumf %68, %69 : vector<2x128xf32>
    %c6 = arith.constant 6 : index
    %c0_52 = arith.constant 0 : index
    %c0_53 = arith.constant 0 : index
    %71 = vector.load %arg4[%c6, %c0_52, %c0_53] : memref<7x128x128xbf16, #tpu.memory_space<vmem>>, vector<1x128x128xbf16>
    %72 = vector.shape_cast %71 : vector<1x128x128xbf16> to vector<128x128xbf16>
    %c6_54 = arith.constant 6 : index
    %c0_55 = arith.constant 0 : index
    %c0_56 = arith.constant 0 : index
    %73 = vector.load %arg5[%c6_54, %c0_55, %c0_56] : memref<7x1x128xf32, #tpu.memory_space<vmem>>, vector<1x1x128xf32>
    %74 = vector.shape_cast %73 : vector<1x1x128xf32> to vector<1x128xf32>
    %75 = arith.truncf %70 : vector<2x128xf32> to vector<2x128xbf16>
    %cst_57 = arith.constant dense<0.000000e+00> : vector<2x128xf32>
    %76 = tpu.matmul %75, %72, %cst_57 {dimension_numbers = #tpu.dot_dimension_numbers<[1], [0], [0], [1], [0, 0, 1, 1], [], []>} : vector<2x128xbf16>, vector<128x128xbf16>, vector<2x128xf32> -> vector<2x128xf32>
    %77 = vector.broadcast %74 : vector<1x128xf32> to vector<2x128xf32>
    %78 = arith.addf %76, %77 : vector<2x128xf32>
    %cst_58 = arith.constant 0.000000e+00 : f32
    %79 = vector.broadcast %cst_58 : f32 to vector<2x128xf32>
    %80 = arith.maximumf %78, %79 : vector<2x128xf32>
    %81 = vector.extract_strided_slice %80 {offsets = [0, 0], sizes = [2, 8], strides = [1, 1]} : vector<2x128xf32> to vector<2x8xf32>
    %82 = arith.negf %81 : vector<2x8xf32>
    %83 = math.exp %82 : vector<2x8xf32>
    %cst_59 = arith.constant 1.000000e+00 : f32
    %84 = vector.broadcast %cst_59 : f32 to vector<2x8xf32>
    %85 = arith.addf %84, %83 : vector<2x8xf32>
    %86 = arith.divf %84, %85 : vector<2x8xf32>
    %c0_60 = arith.constant 0 : index
    %c0_61 = arith.constant 0 : index
    %87 = vector.load %arg3[%c0_60, %c0_61] : memref<2x1xf32, #tpu.memory_space<vmem>>, vector<2x1xf32>
    %c0_62 = arith.constant 0 : index
    %c0_63 = arith.constant 0 : index
    %88 = vector.load %arg6[%c0_62, %c0_63] : memref<58x64xf32, #tpu.memory_space<vmem>>, vector<58x64xf32>
    %c0_64 = arith.constant 0 : index
    %c0_65 = arith.constant 0 : index
    %89 = vector.load %arg7[%c0_64, %c0_65] : memref<1x64xf32, #tpu.memory_space<vmem>>, vector<1x64xf32>
    %c0_66 = arith.constant 0 : index
    %c0_67 = arith.constant 0 : index
    %90 = vector.load %arg8[%c0_66, %c0_67] : memref<32x32xf32, #tpu.memory_space<vmem>>, vector<32x32xf32>
    %c0_68 = arith.constant 0 : index
    %c0_69 = arith.constant 0 : index
    %91 = vector.load %arg9[%c0_68, %c0_69] : memref<1x32xf32, #tpu.memory_space<vmem>>, vector<1x32xf32>
    %c0_70 = arith.constant 0 : index
    %c0_71 = arith.constant 0 : index
    %92 = vector.load %arg10[%c0_70, %c0_71] : memref<16x16xf32, #tpu.memory_space<vmem>>, vector<16x16xf32>
    %c0_72 = arith.constant 0 : index
    %c0_73 = arith.constant 0 : index
    %93 = vector.load %arg11[%c0_72, %c0_73] : memref<1x16xf32, #tpu.memory_space<vmem>>, vector<1x16xf32>
    %cst_74 = arith.constant 0.000000e+00 : f32
    %94 = vector.broadcast %cst_74 : f32 to vector<2x16xf32>
    %cst_75 = arith.constant 0.000000e+00 : f32
    %95 = vector.broadcast %cst_75 : f32 to vector<2x16xf32>
    %cst_76 = arith.constant 0.000000e+00 : f32
    %96 = vector.broadcast %cst_76 : f32 to vector<2x16xf32>
    %cst_77 = arith.constant 0.000000e+00 : f32
    %97 = vector.broadcast %cst_77 : f32 to vector<2x16xf32>
    %cst_78 = arith.constant 0.000000e+00 : f32
    %98 = vector.broadcast %cst_78 : f32 to vector<2x1xf32>
    %99 = tpu.concatenate %98, %87, %86 in 1 : vector<2x1xf32>, vector<2x1xf32>, vector<2x8xf32> -> vector<2x10xf32>
    %100 = tpu.concatenate %96, %97, %99, %94 in 1 : vector<2x16xf32>, vector<2x16xf32>, vector<2x10xf32>, vector<2x16xf32> -> vector<2x58xf32>
    %cst_79 = arith.constant dense<0.000000e+00> : vector<2x64xf32>
    %101 = tpu.matmul %100, %88, %cst_79 {dimension_numbers = #tpu.dot_dimension_numbers<[1], [0], [0], [1], [0, 0, 1, 1], [], []>} : vector<2x58xf32>, vector<58x64xf32>, vector<2x64xf32> -> vector<2x64xf32>
    %102 = vector.broadcast %89 : vector<1x64xf32> to vector<2x64xf32>
    %103 = arith.addf %101, %102 : vector<2x64xf32>
    %104 = arith.negf %103 : vector<2x64xf32>
    %105 = math.exp %104 : vector<2x64xf32>
    %cst_80 = arith.constant 1.000000e+00 : f32
    %106 = vector.broadcast %cst_80 : f32 to vector<2x64xf32>
    %107 = arith.addf %106, %105 : vector<2x64xf32>
    %108 = arith.divf %106, %107 : vector<2x64xf32>
    %109 = vector.extract_strided_slice %108 {offsets = [0, 0], sizes = [2, 16], strides = [1, 1]} : vector<2x64xf32> to vector<2x16xf32>
    %110 = vector.extract_strided_slice %108 {offsets = [0, 16], sizes = [2, 16], strides = [1, 1]} : vector<2x64xf32> to vector<2x16xf32>
    %111 = vector.extract_strided_slice %103 {offsets = [0, 32], sizes = [2, 16], strides = [1, 1]} : vector<2x64xf32> to vector<2x16xf32>
    %112 = math.tanh %111 : vector<2x16xf32>
    %113 = vector.extract_strided_slice %108 {offsets = [0, 48], sizes = [2, 16], strides = [1, 1]} : vector<2x64xf32> to vector<2x16xf32>
    %114 = arith.mulf %110, %95 : vector<2x16xf32>
    %115 = arith.mulf %109, %112 : vector<2x16xf32>
    %116 = arith.addf %114, %115 : vector<2x16xf32>
    %117 = math.tanh %116 : vector<2x16xf32>
    %118 = arith.mulf %113, %117 : vector<2x16xf32>
    %cst_81 = arith.constant dense<0.000000e+00> : vector<2x16xf32>
    %119 = tpu.matmul %118, %92, %cst_81 {dimension_numbers = #tpu.dot_dimension_numbers<[1], [0], [0], [1], [0, 0, 1, 1], [], []>} : vector<2x16xf32>, vector<16x16xf32>, vector<2x16xf32> -> vector<2x16xf32>
    %120 = vector.broadcast %93 : vector<1x16xf32> to vector<2x16xf32>
    %121 = arith.addf %119, %120 : vector<2x16xf32>
    %122 = arith.negf %118 : vector<2x16xf32>
    %123 = math.exp %122 : vector<2x16xf32>
    %cst_82 = arith.constant 1.000000e+00 : f32
    %124 = vector.broadcast %cst_82 : f32 to vector<2x16xf32>
    %125 = arith.addf %124, %123 : vector<2x16xf32>
    %126 = arith.divf %124, %125 : vector<2x16xf32>
    %127 = tpu.concatenate %118, %116 in 1 : vector<2x16xf32>, vector<2x16xf32> -> vector<2x32xf32>
    %cst_83 = arith.constant dense<0.000000e+00> : vector<2x32xf32>
    %128 = tpu.matmul %127, %90, %cst_83 {dimension_numbers = #tpu.dot_dimension_numbers<[1], [0], [0], [1], [0, 0, 1, 1], [], []>} : vector<2x32xf32>, vector<32x32xf32>, vector<2x32xf32> -> vector<2x32xf32>
    %129 = vector.broadcast %91 : vector<1x32xf32> to vector<2x32xf32>
    %130 = arith.addf %128, %129 : vector<2x32xf32>
    %131 = vector.extract_strided_slice %130 {offsets = [0, 0], sizes = [2, 16], strides = [1, 1]} : vector<2x32xf32> to vector<2x16xf32>
    %132 = vector.extract_strided_slice %130 {offsets = [0, 16], sizes = [2, 16], strides = [1, 1]} : vector<2x32xf32> to vector<2x16xf32>
    %133 = vector.shape_cast %121 : vector<2x16xf32> to vector<2x1x16xf32>
    %134 = vector.shape_cast %131 : vector<2x16xf32> to vector<2x1x16xf32>
    %135 = arith.mulf %133, %134 : vector<2x1x16xf32>
    %cst_84 = arith.constant dense<0.000000e+00> : vector<2x1xf32>
    %136 = vector.multi_reduction <add>, %135, %cst_84 [2] : vector<2x1x16xf32> to vector<2x1xf32>
    %137 = arith.negf %136 : vector<2x1xf32>
    %138 = math.exp %137 : vector<2x1xf32>
    %cst_85 = arith.constant 1.000000e+00 : f32
    %139 = vector.broadcast %cst_85 : f32 to vector<2x1xf32>
    %140 = arith.addf %139, %138 : vector<2x1xf32>
    %141 = arith.divf %139, %140 : vector<2x1xf32>
    %142 = vector.shape_cast %132 : vector<2x16xf32> to vector<2x1x16xf32>
    %143 = arith.mulf %133, %142 : vector<2x1x16xf32>
    %cst_86 = arith.constant dense<0.000000e+00> : vector<2x1xf32>
    %144 = vector.multi_reduction <add>, %143, %cst_86 [2] : vector<2x1x16xf32> to vector<2x1xf32>
    %145 = arith.negf %144 : vector<2x1xf32>
    %146 = math.exp %145 : vector<2x1xf32>
    %cst_87 = arith.constant 1.000000e+00 : f32
    %147 = vector.broadcast %cst_87 : f32 to vector<2x1xf32>
    %148 = arith.addf %147, %146 : vector<2x1xf32>
    %149 = arith.divf %147, %148 : vector<2x1xf32>
    %cst_88 = arith.constant dense<0xFF800000> : vector<2xf32>
    %150 = vector.multi_reduction <maximumf>, %141, %cst_88 [1] : vector<2x1xf32> to vector<2xf32>
    %151 = vector.shape_cast %150 : vector<2xf32> to vector<2x1xf32>
    %152 = arith.subf %141, %151 : vector<2x1xf32>
    %153 = math.exp %152 : vector<2x1xf32>
    %cst_89 = arith.constant dense<0.000000e+00> : vector<2xf32>
    %154 = vector.multi_reduction <add>, %153, %cst_89 [1] : vector<2x1xf32> to vector<2xf32>
    %155 = vector.shape_cast %154 : vector<2xf32> to vector<2x1xf32>
    %156 = tpu.reciprocal %155 {approx = true} : vector<2x1xf32> -> vector<2x1xf32>
    %157 = arith.mulf %153, %156 : vector<2x1xf32>
    %cst_90 = arith.constant dense<0xFF800000> : vector<2xf32>
    %158 = vector.multi_reduction <maximumf>, %149, %cst_90 [1] : vector<2x1xf32> to vector<2xf32>
    %159 = vector.shape_cast %158 : vector<2xf32> to vector<2x1xf32>
    %160 = arith.subf %149, %159 : vector<2x1xf32>
    %161 = math.exp %160 : vector<2x1xf32>
    %cst_91 = arith.constant dense<0.000000e+00> : vector<2xf32>
    %162 = vector.multi_reduction <add>, %161, %cst_91 [1] : vector<2x1xf32> to vector<2xf32>
    %163 = vector.shape_cast %162 : vector<2xf32> to vector<2x1xf32>
    %164 = tpu.reciprocal %163 {approx = true} : vector<2x1xf32> -> vector<2x1xf32>
    %165 = arith.mulf %161, %164 : vector<2x1xf32>
    %166 = vector.shape_cast %157 : vector<2x1xf32> to vector<2x1x1xf32>
    %167 = vector.broadcast %166 : vector<2x1x1xf32> to vector<2x1x16xf32>
    %168 = arith.mulf %167, %133 : vector<2x1x16xf32>
    %cst_92 = arith.constant dense<0.000000e+00> : vector<2x16xf32>
    %169 = vector.multi_reduction <add>, %168, %cst_92 [1] : vector<2x1x16xf32> to vector<2x16xf32>
    %170 = vector.shape_cast %165 : vector<2x1xf32> to vector<2x1x1xf32>
    %171 = vector.broadcast %170 : vector<2x1x1xf32> to vector<2x1x16xf32>
    %172 = arith.mulf %171, %133 : vector<2x1x16xf32>
    %cst_93 = arith.constant dense<0.000000e+00> : vector<2x16xf32>
    %173 = vector.multi_reduction <add>, %172, %cst_93 [1] : vector<2x1x16xf32> to vector<2x16xf32>
    %cst_94 = arith.constant 1.000000e+00 : f32
    %174 = vector.broadcast %cst_94 : f32 to vector<2x1xf32>
    %175 = tpu.concatenate %174, %87, %86 in 1 : vector<2x1xf32>, vector<2x1xf32>, vector<2x8xf32> -> vector<2x10xf32>
    %176 = tpu.concatenate %169, %173, %175, %118 in 1 : vector<2x16xf32>, vector<2x16xf32>, vector<2x10xf32>, vector<2x16xf32> -> vector<2x58xf32>
    %cst_95 = arith.constant dense<0.000000e+00> : vector<2x64xf32>
    %177 = tpu.matmul %176, %88, %cst_95 {dimension_numbers = #tpu.dot_dimension_numbers<[1], [0], [0], [1], [0, 0, 1, 1], [], []>} : vector<2x58xf32>, vector<58x64xf32>, vector<2x64xf32> -> vector<2x64xf32>
    %178 = vector.broadcast %89 : vector<1x64xf32> to vector<2x64xf32>
    %179 = arith.addf %177, %178 : vector<2x64xf32>
    %180 = arith.negf %179 : vector<2x64xf32>
    %181 = math.exp %180 : vector<2x64xf32>
    %cst_96 = arith.constant 1.000000e+00 : f32
    %182 = vector.broadcast %cst_96 : f32 to vector<2x64xf32>
    %183 = arith.addf %182, %181 : vector<2x64xf32>
    %184 = arith.divf %182, %183 : vector<2x64xf32>
    %185 = vector.extract_strided_slice %184 {offsets = [0, 0], sizes = [2, 16], strides = [1, 1]} : vector<2x64xf32> to vector<2x16xf32>
    %186 = vector.extract_strided_slice %184 {offsets = [0, 16], sizes = [2, 16], strides = [1, 1]} : vector<2x64xf32> to vector<2x16xf32>
    %187 = vector.extract_strided_slice %179 {offsets = [0, 32], sizes = [2, 16], strides = [1, 1]} : vector<2x64xf32> to vector<2x16xf32>
    %188 = math.tanh %187 : vector<2x16xf32>
    %189 = vector.extract_strided_slice %184 {offsets = [0, 48], sizes = [2, 16], strides = [1, 1]} : vector<2x64xf32> to vector<2x16xf32>
    %190 = arith.mulf %186, %116 : vector<2x16xf32>
    %191 = arith.mulf %185, %188 : vector<2x16xf32>
    %192 = arith.addf %190, %191 : vector<2x16xf32>
    %193 = math.tanh %192 : vector<2x16xf32>
    %194 = arith.mulf %189, %193 : vector<2x16xf32>
    %cst_97 = arith.constant dense<0.000000e+00> : vector<2x16xf32>
    %195 = tpu.matmul %194, %92, %cst_97 {dimension_numbers = #tpu.dot_dimension_numbers<[1], [0], [0], [1], [0, 0, 1, 1], [], []>} : vector<2x16xf32>, vector<16x16xf32>, vector<2x16xf32> -> vector<2x16xf32>
    %196 = vector.broadcast %93 : vector<1x16xf32> to vector<2x16xf32>
    %197 = arith.addf %195, %196 : vector<2x16xf32>
    %198 = arith.negf %194 : vector<2x16xf32>
    %199 = math.exp %198 : vector<2x16xf32>
    %cst_98 = arith.constant 1.000000e+00 : f32
    %200 = vector.broadcast %cst_98 : f32 to vector<2x16xf32>
    %201 = arith.addf %200, %199 : vector<2x16xf32>
    %202 = arith.divf %200, %201 : vector<2x16xf32>
    %203 = tpu.concatenate %194, %192 in 1 : vector<2x16xf32>, vector<2x16xf32> -> vector<2x32xf32>
    %cst_99 = arith.constant dense<0.000000e+00> : vector<2x32xf32>
    %204 = tpu.matmul %203, %90, %cst_99 {dimension_numbers = #tpu.dot_dimension_numbers<[1], [0], [0], [1], [0, 0, 1, 1], [], []>} : vector<2x32xf32>, vector<32x32xf32>, vector<2x32xf32> -> vector<2x32xf32>
    %205 = vector.broadcast %91 : vector<1x32xf32> to vector<2x32xf32>
    %206 = arith.addf %204, %205 : vector<2x32xf32>
    %207 = vector.extract_strided_slice %206 {offsets = [0, 0], sizes = [2, 16], strides = [1, 1]} : vector<2x32xf32> to vector<2x16xf32>
    %208 = vector.extract_strided_slice %206 {offsets = [0, 16], sizes = [2, 16], strides = [1, 1]} : vector<2x32xf32> to vector<2x16xf32>
    %209 = vector.shape_cast %121 : vector<2x16xf32> to vector<2x1x16xf32>
    %210 = vector.shape_cast %197 : vector<2x16xf32> to vector<2x1x16xf32>
    %211 = tpu.concatenate %209, %210 in 1 : vector<2x1x16xf32>, vector<2x1x16xf32> -> vector<2x2x16xf32>
    %212 = vector.shape_cast %207 : vector<2x16xf32> to vector<2x1x16xf32>
    %213 = vector.broadcast %212 : vector<2x1x16xf32> to vector<2x2x16xf32>
    %214 = arith.mulf %211, %213 : vector<2x2x16xf32>
    %cst_100 = arith.constant dense<0.000000e+00> : vector<2x2xf32>
    %215 = vector.multi_reduction <add>, %214, %cst_100 [2] : vector<2x2x16xf32> to vector<2x2xf32>
    %216 = arith.negf %215 : vector<2x2xf32>
    %217 = math.exp %216 : vector<2x2xf32>
    %cst_101 = arith.constant 1.000000e+00 : f32
    %218 = vector.broadcast %cst_101 : f32 to vector<2x2xf32>
    %219 = arith.addf %218, %217 : vector<2x2xf32>
    %220 = arith.divf %218, %219 : vector<2x2xf32>
    %221 = vector.shape_cast %208 : vector<2x16xf32> to vector<2x1x16xf32>
    %222 = vector.broadcast %221 : vector<2x1x16xf32> to vector<2x2x16xf32>
    %223 = arith.mulf %211, %222 : vector<2x2x16xf32>
    %cst_102 = arith.constant dense<0.000000e+00> : vector<2x2xf32>
    %224 = vector.multi_reduction <add>, %223, %cst_102 [2] : vector<2x2x16xf32> to vector<2x2xf32>
    %225 = arith.negf %224 : vector<2x2xf32>
    %226 = math.exp %225 : vector<2x2xf32>
    %cst_103 = arith.constant 1.000000e+00 : f32
    %227 = vector.broadcast %cst_103 : f32 to vector<2x2xf32>
    %228 = arith.addf %227, %226 : vector<2x2xf32>
    %229 = arith.divf %227, %228 : vector<2x2xf32>
    %cst_104 = arith.constant dense<0xFF800000> : vector<2xf32>
    %230 = vector.multi_reduction <maximumf>, %220, %cst_104 [1] : vector<2x2xf32> to vector<2xf32>
    %231 = vector.shape_cast %230 : vector<2xf32> to vector<2x1xf32>
    %232 = vector.broadcast %231 : vector<2x1xf32> to vector<2x2xf32>
    %233 = arith.subf %220, %232 : vector<2x2xf32>
    %234 = math.exp %233 : vector<2x2xf32>
    %cst_105 = arith.constant dense<0.000000e+00> : vector<2xf32>
    %235 = vector.multi_reduction <add>, %234, %cst_105 [1] : vector<2x2xf32> to vector<2xf32>
    %236 = vector.shape_cast %235 : vector<2xf32> to vector<2x1xf32>
    %237 = tpu.reciprocal %236 {approx = true} : vector<2x1xf32> -> vector<2x1xf32>
    %238 = vector.broadcast %237 : vector<2x1xf32> to vector<2x2xf32>
    %239 = arith.mulf %234, %238 : vector<2x2xf32>
    %cst_106 = arith.constant dense<0xFF800000> : vector<2xf32>
    %240 = vector.multi_reduction <maximumf>, %229, %cst_106 [1] : vector<2x2xf32> to vector<2xf32>
    %241 = vector.shape_cast %240 : vector<2xf32> to vector<2x1xf32>
    %242 = vector.broadcast %241 : vector<2x1xf32> to vector<2x2xf32>
    %243 = arith.subf %229, %242 : vector<2x2xf32>
    %244 = math.exp %243 : vector<2x2xf32>
    %cst_107 = arith.constant dense<0.000000e+00> : vector<2xf32>
    %245 = vector.multi_reduction <add>, %244, %cst_107 [1] : vector<2x2xf32> to vector<2xf32>
    %246 = vector.shape_cast %245 : vector<2xf32> to vector<2x1xf32>
    %247 = tpu.reciprocal %246 {approx = true} : vector<2x1xf32> -> vector<2x1xf32>
    %248 = vector.broadcast %247 : vector<2x1xf32> to vector<2x2xf32>
    %249 = arith.mulf %244, %248 : vector<2x2xf32>
    %250 = vector.shape_cast %239 : vector<2x2xf32> to vector<2x2x1xf32>
    %251 = vector.broadcast %250 : vector<2x2x1xf32> to vector<2x2x16xf32>
    %252 = arith.mulf %251, %211 : vector<2x2x16xf32>
    %cst_108 = arith.constant dense<0.000000e+00> : vector<2x16xf32>
    %253 = vector.multi_reduction <add>, %252, %cst_108 [1] : vector<2x2x16xf32> to vector<2x16xf32>
    %254 = vector.shape_cast %249 : vector<2x2xf32> to vector<2x2x1xf32>
    %255 = vector.broadcast %254 : vector<2x2x1xf32> to vector<2x2x16xf32>
    %256 = arith.mulf %255, %211 : vector<2x2x16xf32>
    %cst_109 = arith.constant dense<0.000000e+00> : vector<2x16xf32>
    %257 = vector.multi_reduction <add>, %256, %cst_109 [1] : vector<2x2x16xf32> to vector<2x16xf32>
    %cst_110 = arith.constant 2.000000e+00 : f32
    %258 = vector.broadcast %cst_110 : f32 to vector<2x1xf32>
    %259 = tpu.concatenate %258, %87, %86 in 1 : vector<2x1xf32>, vector<2x1xf32>, vector<2x8xf32> -> vector<2x10xf32>
    %260 = tpu.concatenate %253, %257, %259, %194 in 1 : vector<2x16xf32>, vector<2x16xf32>, vector<2x10xf32>, vector<2x16xf32> -> vector<2x58xf32>
    %cst_111 = arith.constant dense<0.000000e+00> : vector<2x64xf32>
    %261 = tpu.matmul %260, %88, %cst_111 {dimension_numbers = #tpu.dot_dimension_numbers<[1], [0], [0], [1], [0, 0, 1, 1], [], []>} : vector<2x58xf32>, vector<58x64xf32>, vector<2x64xf32> -> vector<2x64xf32>
    %262 = vector.broadcast %89 : vector<1x64xf32> to vector<2x64xf32>
    %263 = arith.addf %261, %262 : vector<2x64xf32>
    %264 = arith.negf %263 : vector<2x64xf32>
    %265 = math.exp %264 : vector<2x64xf32>
    %cst_112 = arith.constant 1.000000e+00 : f32
    %266 = vector.broadcast %cst_112 : f32 to vector<2x64xf32>
    %267 = arith.addf %266, %265 : vector<2x64xf32>
    %268 = arith.divf %266, %267 : vector<2x64xf32>
    %269 = vector.extract_strided_slice %268 {offsets = [0, 0], sizes = [2, 16], strides = [1, 1]} : vector<2x64xf32> to vector<2x16xf32>
    %270 = vector.extract_strided_slice %268 {offsets = [0, 16], sizes = [2, 16], strides = [1, 1]} : vector<2x64xf32> to vector<2x16xf32>
    %271 = vector.extract_strided_slice %263 {offsets = [0, 32], sizes = [2, 16], strides = [1, 1]} : vector<2x64xf32> to vector<2x16xf32>
    %272 = math.tanh %271 : vector<2x16xf32>
    %273 = vector.extract_strided_slice %268 {offsets = [0, 48], sizes = [2, 16], strides = [1, 1]} : vector<2x64xf32> to vector<2x16xf32>
    %274 = arith.mulf %270, %192 : vector<2x16xf32>
    %275 = arith.mulf %269, %272 : vector<2x16xf32>
    %276 = arith.addf %274, %275 : vector<2x16xf32>
    %277 = math.tanh %276 : vector<2x16xf32>
    %278 = arith.mulf %273, %277 : vector<2x16xf32>
    %cst_113 = arith.constant dense<0.000000e+00> : vector<2x16xf32>
    %279 = tpu.matmul %278, %92, %cst_113 {dimension_numbers = #tpu.dot_dimension_numbers<[1], [0], [0], [1], [0, 0, 1, 1], [], []>} : vector<2x16xf32>, vector<16x16xf32>, vector<2x16xf32> -> vector<2x16xf32>
    %280 = vector.broadcast %93 : vector<1x16xf32> to vector<2x16xf32>
    %281 = arith.addf %279, %280 : vector<2x16xf32>
    %282 = arith.negf %278 : vector<2x16xf32>
    %283 = math.exp %282 : vector<2x16xf32>
    %cst_114 = arith.constant 1.000000e+00 : f32
    %284 = vector.broadcast %cst_114 : f32 to vector<2x16xf32>
    %285 = arith.addf %284, %283 : vector<2x16xf32>
    %286 = arith.divf %284, %285 : vector<2x16xf32>
    %287 = tpu.concatenate %278, %276 in 1 : vector<2x16xf32>, vector<2x16xf32> -> vector<2x32xf32>
    %cst_115 = arith.constant dense<0.000000e+00> : vector<2x32xf32>
    %288 = tpu.matmul %287, %90, %cst_115 {dimension_numbers = #tpu.dot_dimension_numbers<[1], [0], [0], [1], [0, 0, 1, 1], [], []>} : vector<2x32xf32>, vector<32x32xf32>, vector<2x32xf32> -> vector<2x32xf32>
    %289 = vector.broadcast %91 : vector<1x32xf32> to vector<2x32xf32>
    %290 = arith.addf %288, %289 : vector<2x32xf32>
    %291 = vector.extract_strided_slice %290 {offsets = [0, 0], sizes = [2, 16], strides = [1, 1]} : vector<2x32xf32> to vector<2x16xf32>
    %292 = vector.extract_strided_slice %290 {offsets = [0, 16], sizes = [2, 16], strides = [1, 1]} : vector<2x32xf32> to vector<2x16xf32>
    %293 = vector.shape_cast %121 : vector<2x16xf32> to vector<2x1x16xf32>
    %294 = vector.shape_cast %197 : vector<2x16xf32> to vector<2x1x16xf32>
    %295 = vector.shape_cast %281 : vector<2x16xf32> to vector<2x1x16xf32>
    %296 = tpu.concatenate %293, %294, %295 in 1 : vector<2x1x16xf32>, vector<2x1x16xf32>, vector<2x1x16xf32> -> vector<2x3x16xf32>
    %297 = vector.shape_cast %291 : vector<2x16xf32> to vector<2x1x16xf32>
    %298 = vector.broadcast %297 : vector<2x1x16xf32> to vector<2x3x16xf32>
    %299 = arith.mulf %296, %298 : vector<2x3x16xf32>
    %cst_116 = arith.constant dense<0.000000e+00> : vector<2x3xf32>
    %300 = vector.multi_reduction <add>, %299, %cst_116 [2] : vector<2x3x16xf32> to vector<2x3xf32>
    %301 = arith.negf %300 : vector<2x3xf32>
    %302 = math.exp %301 : vector<2x3xf32>
    %cst_117 = arith.constant 1.000000e+00 : f32
    %303 = vector.broadcast %cst_117 : f32 to vector<2x3xf32>
    %304 = arith.addf %303, %302 : vector<2x3xf32>
    %305 = arith.divf %303, %304 : vector<2x3xf32>
    %306 = vector.shape_cast %292 : vector<2x16xf32> to vector<2x1x16xf32>
    %307 = vector.broadcast %306 : vector<2x1x16xf32> to vector<2x3x16xf32>
    %308 = arith.mulf %296, %307 : vector<2x3x16xf32>
    %cst_118 = arith.constant dense<0.000000e+00> : vector<2x3xf32>
    %309 = vector.multi_reduction <add>, %308, %cst_118 [2] : vector<2x3x16xf32> to vector<2x3xf32>
    %310 = arith.negf %309 : vector<2x3xf32>
    %311 = math.exp %310 : vector<2x3xf32>
    %cst_119 = arith.constant 1.000000e+00 : f32
    %312 = vector.broadcast %cst_119 : f32 to vector<2x3xf32>
    %313 = arith.addf %312, %311 : vector<2x3xf32>
    %314 = arith.divf %312, %313 : vector<2x3xf32>
    %cst_120 = arith.constant dense<0xFF800000> : vector<2xf32>
    %315 = vector.multi_reduction <maximumf>, %305, %cst_120 [1] : vector<2x3xf32> to vector<2xf32>
    %316 = vector.shape_cast %315 : vector<2xf32> to vector<2x1xf32>
    %317 = vector.broadcast %316 : vector<2x1xf32> to vector<2x3xf32>
    %318 = arith.subf %305, %317 : vector<2x3xf32>
    %319 = math.exp %318 : vector<2x3xf32>
    %cst_121 = arith.constant dense<0.000000e+00> : vector<2xf32>
    %320 = vector.multi_reduction <add>, %319, %cst_121 [1] : vector<2x3xf32> to vector<2xf32>
    %321 = vector.shape_cast %320 : vector<2xf32> to vector<2x1xf32>
    %322 = tpu.reciprocal %321 {approx = true} : vector<2x1xf32> -> vector<2x1xf32>
    %323 = vector.broadcast %322 : vector<2x1xf32> to vector<2x3xf32>
    %324 = arith.mulf %319, %323 : vector<2x3xf32>
    %cst_122 = arith.constant dense<0xFF800000> : vector<2xf32>
    %325 = vector.multi_reduction <maximumf>, %314, %cst_122 [1] : vector<2x3xf32> to vector<2xf32>
    %326 = vector.shape_cast %325 : vector<2xf32> to vector<2x1xf32>
    %327 = vector.broadcast %326 : vector<2x1xf32> to vector<2x3xf32>
    %328 = arith.subf %314, %327 : vector<2x3xf32>
    %329 = math.exp %328 : vector<2x3xf32>
    %cst_123 = arith.constant dense<0.000000e+00> : vector<2xf32>
    %330 = vector.multi_reduction <add>, %329, %cst_123 [1] : vector<2x3xf32> to vector<2xf32>
    %331 = vector.shape_cast %330 : vector<2xf32> to vector<2x1xf32>
    %332 = tpu.reciprocal %331 {approx = true} : vector<2x1xf32> -> vector<2x1xf32>
    %333 = vector.broadcast %332 : vector<2x1xf32> to vector<2x3xf32>
    %334 = arith.mulf %329, %333 : vector<2x3xf32>
    %335 = vector.shape_cast %324 : vector<2x3xf32> to vector<2x3x1xf32>
    %336 = vector.broadcast %335 : vector<2x3x1xf32> to vector<2x3x16xf32>
    %337 = arith.mulf %336, %296 : vector<2x3x16xf32>
    %cst_124 = arith.constant dense<0.000000e+00> : vector<2x16xf32>
    %338 = vector.multi_reduction <add>, %337, %cst_124 [1] : vector<2x3x16xf32> to vector<2x16xf32>
    %339 = vector.shape_cast %334 : vector<2x3xf32> to vector<2x3x1xf32>
    %340 = vector.broadcast %339 : vector<2x3x1xf32> to vector<2x3x16xf32>
    %341 = arith.mulf %340, %296 : vector<2x3x16xf32>
    %cst_125 = arith.constant dense<0.000000e+00> : vector<2x16xf32>
    %342 = vector.multi_reduction <add>, %341, %cst_125 [1] : vector<2x3x16xf32> to vector<2x16xf32>
    %cst_126 = arith.constant 3.000000e+00 : f32
    %343 = vector.broadcast %cst_126 : f32 to vector<2x1xf32>
    %344 = tpu.concatenate %343, %87, %86 in 1 : vector<2x1xf32>, vector<2x1xf32>, vector<2x8xf32> -> vector<2x10xf32>
    %345 = tpu.concatenate %338, %342, %344, %278 in 1 : vector<2x16xf32>, vector<2x16xf32>, vector<2x10xf32>, vector<2x16xf32> -> vector<2x58xf32>
    %cst_127 = arith.constant dense<0.000000e+00> : vector<2x64xf32>
    %346 = tpu.matmul %345, %88, %cst_127 {dimension_numbers = #tpu.dot_dimension_numbers<[1], [0], [0], [1], [0, 0, 1, 1], [], []>} : vector<2x58xf32>, vector<58x64xf32>, vector<2x64xf32> -> vector<2x64xf32>
    %347 = vector.broadcast %89 : vector<1x64xf32> to vector<2x64xf32>
    %348 = arith.addf %346, %347 : vector<2x64xf32>
    %349 = arith.negf %348 : vector<2x64xf32>
    %350 = math.exp %349 : vector<2x64xf32>
    %cst_128 = arith.constant 1.000000e+00 : f32
    %351 = vector.broadcast %cst_128 : f32 to vector<2x64xf32>
    %352 = arith.addf %351, %350 : vector<2x64xf32>
    %353 = arith.divf %351, %352 : vector<2x64xf32>
    %354 = vector.extract_strided_slice %353 {offsets = [0, 0], sizes = [2, 16], strides = [1, 1]} : vector<2x64xf32> to vector<2x16xf32>
    %355 = vector.extract_strided_slice %353 {offsets = [0, 16], sizes = [2, 16], strides = [1, 1]} : vector<2x64xf32> to vector<2x16xf32>
    %356 = vector.extract_strided_slice %348 {offsets = [0, 32], sizes = [2, 16], strides = [1, 1]} : vector<2x64xf32> to vector<2x16xf32>
    %357 = math.tanh %356 : vector<2x16xf32>
    %358 = vector.extract_strided_slice %353 {offsets = [0, 48], sizes = [2, 16], strides = [1, 1]} : vector<2x64xf32> to vector<2x16xf32>
    %359 = arith.mulf %355, %276 : vector<2x16xf32>
    %360 = arith.mulf %354, %357 : vector<2x16xf32>
    %361 = arith.addf %359, %360 : vector<2x16xf32>
    %362 = math.tanh %361 : vector<2x16xf32>
    %363 = arith.mulf %358, %362 : vector<2x16xf32>
    %364 = arith.negf %363 : vector<2x16xf32>
    %365 = math.exp %364 : vector<2x16xf32>
    %cst_129 = arith.constant 1.000000e+00 : f32
    %366 = vector.broadcast %cst_129 : f32 to vector<2x16xf32>
    %367 = arith.addf %366, %365 : vector<2x16xf32>
    %368 = arith.divf %366, %367 : vector<2x16xf32>
    %369 = tpu.concatenate %126, %202, %286, %368 in 1 : vector<2x16xf32>, vector<2x16xf32>, vector<2x16xf32>, vector<2x16xf32> -> vector<2x64xf32>
    %c0_130 = arith.constant 0 : index
    %c0_131 = arith.constant 0 : index
    %370 = vector.load %arg12[%c0_130, %c0_131] : memref<2x64xf32, #tpu.memory_space<vmem>>, vector<2x64xf32>
    tpu.vector_store %arg12[%c0_130, %c0_131], %369 {strides = array<i32>} : memref<2x64xf32, #tpu.memory_space<vmem>>, vector<2x64xf32>,
    return
  }
  func.func @transform_0(%arg0: i32) -> (i32, i32, i32) {
    %c0_i32 = arith.constant 0 : i32
    %c0_i32_0 = arith.constant 0 : i32
    %c0_i32_1 = arith.constant 0 : i32
    %c0_i32_2 = arith.constant 0 : i32
    return %c0_i32, %c0_i32_0, %c0_i32_1 : i32, i32, i32
  }
  func.func @transform_1(%arg0: i32) -> (i32, i32, i32) {
    %c0_i32 = arith.constant 0 : i32
    %c0_i32_0 = arith.constant 0 : i32
    %c0_i32_1 = arith.constant 0 : i32
    %c0_i32_2 = arith.constant 0 : i32
    return %c0_i32, %c0_i32_0, %c0_i32_1 : i32, i32, i32
  }
  func.func @transform_2(%arg0: i32) -> (i32, i32) {
    %c0_i32 = arith.constant 0 : i32
    %c0_i32_0 = arith.constant 0 : i32
    %c0_i32_1 = arith.constant 0 : i32
    return %c0_i32, %c0_i32_0 : i32, i32
  }
  func.func @transform_3(%arg0: i32) -> (i32, i32, i32) {
    %c0_i32 = arith.constant 0 : i32
    %c0_i32_0 = arith.constant 0 : i32
    %c0_i32_1 = arith.constant 0 : i32
    %c0_i32_2 = arith.constant 0 : i32
    return %c0_i32, %c0_i32_0, %c0_i32_1 : i32, i32, i32
  }
  func.func @transform_4(%arg0: i32) -> (i32, i32, i32) {
    %c0_i32 = arith.constant 0 : i32
    %c0_i32_0 = arith.constant 0 : i32
    %c0_i32_1 = arith.constant 0 : i32
    %c0_i32_2 = arith.constant 0 : i32
    return %c0_i32, %c0_i32_0, %c0_i32_1 : i32, i32, i32
  }
  func.func @transform_5(%arg0: i32) -> (i32, i32) {
    %c0_i32 = arith.constant 0 : i32
    %c0_i32_0 = arith.constant 0 : i32
    %c0_i32_1 = arith.constant 0 : i32
    return %c0_i32, %c0_i32_0 : i32, i32
  }
  func.func @transform_6(%arg0: i32) -> (i32, i32) {
    %c0_i32 = arith.constant 0 : i32
    %c0_i32_0 = arith.constant 0 : i32
    %c0_i32_1 = arith.constant 0 : i32
    return %c0_i32, %c0_i32_0 : i32, i32
  }
  func.func @transform_7(%arg0: i32) -> (i32, i32) {
    %c0_i32 = arith.constant 0 : i32
    %c0_i32_0 = arith.constant 0 : i32
    %c0_i32_1 = arith.constant 0 : i32
    return %c0_i32, %c0_i32_0 : i32, i32
  }
  func.func @transform_8(%arg0: i32) -> (i32, i32) {
    %c0_i32 = arith.constant 0 : i32
    %c0_i32_0 = arith.constant 0 : i32
    %c0_i32_1 = arith.constant 0 : i32
    return %c0_i32, %c0_i32_0 : i32, i32
  }
  func.func @transform_9(%arg0: i32) -> (i32, i32) {
    %c0_i32 = arith.constant 0 : i32
    %c0_i32_0 = arith.constant 0 : i32
    %c0_i32_1 = arith.constant 0 : i32
    return %c0_i32, %c0_i32_0 : i32, i32
  }
  func.func @transform_10(%arg0: i32) -> (i32, i32) {
    %c0_i32 = arith.constant 0 : i32
    %c0_i32_0 = arith.constant 0 : i32
    %c0_i32_1 = arith.constant 0 : i32
    return %c0_i32, %c0_i32_0 : i32, i32
  }
  func.func @transform_11(%arg0: i32) -> (i32, i32) {
    %c0_i32 = arith.constant 0 : i32
    %c0_i32_0 = arith.constant 0 : i32
    %c0_i32_1 = arith.constant 0 : i32
    return %c0_i32, %c0_i32_0 : i32, i32
  }
}

</mosaic_0001>

<bundles_post_ra>
// kernel: tpu_custom_call.1
= control target key start
LH: loop header
LB: loop body
LE: loop exit
PB: predicated region body
PF: predicated region fallthrough
CT: control target
= control target key end

     0   :  { %16 = vsyncpa [#allocation3], 0  ;;  %s3217_s0 = inlined_call_operand.hbm [shape: f32[2,8,16], index: 0, kind: input, shape index: {}]   ;;  %s3218_s1 = inlined_call_operand.hbm [shape: f32[2,8,10], index: 1, kind: input, shape index: {}]   ;;  %s3219_s2 = inlined_call_operand.vmem [shape: f32[2,1], index: 2, kind: input, shape index: {}]   ;;  %s3220_s3 = inlined_call_operand.hbm [shape: bf16[7,128,128], index: 3, kind: input, shape index: {}]   ;;  %s3221_s4 = inlined_call_operand.hbm [shape: f32[7,1,128], index: 4, kind: input, shape index: {}]   ;;  %s3222_s5 = inlined_call_operand.hbm [shape: f32[58,64], index: 5, kind: input, shape index: {}]   ;;  %s3223_s6 = inlined_call_operand.vmem [shape: f32[1,64], index: 6, kind: input, shape index: {}]   ;;  %s3224_s7 = inlined_call_operand.hbm [shape: f32[32,32], index: 7, kind: input, shape index: {}]   ;;  %s3225_s8 = inlined_call_operand.vmem [shape: f32[1,32], index: 8, kind: input, shape index: {}]   ;;  %s3226_s9 = inlined_call_operand.hbm [shape: f32[16,16], index: 9, kind: input, shape index: {}]   ;;  %s3227_s10 = inlined_call_operand.vmem [shape: f32[1,16], index: 10, kind: input, shape index: {}]   ;;  %s3228_s11 = inlined_call_operand.hbm [shape: f32[2,64], index: 11, kind: output, shape index: {}]  }
   0x1   :  { %17 = vsyncpa [#allocation6], 0 }
   0x2   :  { %18 = vsyncpa [#allocation9], 0 }
   0x3   :  { %19 = vsyncpa [#allocation12], 0 }
   0x4   :  { %20 = vsyncpa [#allocation4], 0  ;;  %s38_s19 = sshll.u32 %s3218_s1, 4  ;;  %s2785_s20 = smov [#allocation5]   ;;  %s39_s19 = int_to_ptr.hbm [resolvable:$true] %s38_s19 }
   0x5   :  { %s40_s21 = sshll.u32 %s2785_s20, 4  ;;  %s66_s24 = sshll.u32 %s3221_s4, 4  ;;  %s41_s21 = int_to_ptr.vmem [resolvable:$true] %s40_s21  ;;  %s67_s24 = int_to_ptr.hbm [resolvable:$true] %s66_s24 }
   0x6   :  { %s2786_s25 = smov 128   ;;  %s2787_s26 = smov 8  }
   0x7   :  { %46 = dma.hbm_to_vmem [thread:$0]  %s39_s19, 256, %s41_s21, [#allocation6], %s2786_s25, %s2786_s25, %s2787_s26  }
   0x8   :  { %s2788_s27 = smov [#allocation8]   ;;  %s2789_s29 = smov 16  }
   0x9   :  { %s68_s28 = sshll.u32 %s2788_s27, 4  ;;  %s2790_s1 = smov 1   ;;  %s69_s28 = int_to_ptr.vmem [resolvable:$true] %s68_s28 }
   0xa   :  { %74 = dma.hbm_to_vmem [thread:$0]  %s67_s24, 112, %s69_s28, [#allocation9], %s2789_s29, %s2789_s29, %s2790_s1  }
   0xb   :  { %s94_s4 = sshll.u32 %s3224_s7, 4  ;;  %s2791_s13 = smov [#allocation11]   ;;  %s95_s4 = int_to_ptr.hbm [resolvable:$true] %s94_s4 }
   0xc   :  { %s96_s14 = sshll.u32 %s2791_s13, 4  ;;  %s25_s17 = sshll.u32 %s3217_s0, 4  ;;  %s97_s14 = int_to_ptr.vmem [resolvable:$true] %s96_s14  ;;  %s26_s17 = int_to_ptr.hbm [resolvable:$true] %s25_s17 }
   0xd   :  { %102 = dma.hbm_to_vmem [thread:$0]  %s95_s4, 512, %s97_s14, [#allocation12], %s2786_s25, %s2786_s25, %s2787_s26  }
   0xe   :  { %s2792_s18 = smov [#allocation2]   ;;  %s53_s22 = sshll.u32 %s3220_s3, 4  ;;  %s54_s22 = int_to_ptr.hbm [resolvable:$true] %s53_s22 }
   0xf   :  { %s27_s19 = sshll.u32 %s2792_s18, 4  ;;  %s2793_s7 = smov [#allocation7]   ;;  %s28_s19 = int_to_ptr.vmem [resolvable:$true] %s27_s19 }
  0x10   :  { %33 = dma.hbm_to_vmem [thread:$0]  %s26_s17, 256, %s28_s19, [#allocation3], %s2786_s25, %s2786_s25, %s2787_s26  }
  0x11   :  { %s55_s23 = sshll.u32 %s2793_s7, 4  ;;  %s79_s27 = sshll.u32 %s3222_s5, 4  ;;  %s56_s23 = int_to_ptr.vmem [resolvable:$true] %s55_s23  ;;  %s80_s27 = int_to_ptr.hbm [resolvable:$true] %s79_s27 }
  0x12   :  { %s2794_s28 = smov 64   ;;  %s2795_s30 = smov 4  }
  0x13   :  { %61 = dma.hbm_to_vmem [thread:$0]  %s54_s22, 7168, %s56_s23, [#allocation6], %s2794_s28, %s2794_s28, %s2795_s30  }
  0x14   :  { %s2796_s12 = smov [#allocation10]   ;;  %s109_s14 = sshll.u32 %s3226_s9, 4  ;;  %s110_s14 = int_to_ptr.hbm [resolvable:$true] %s109_s14 }
  0x15   :  { %s81_s4 = sshll.u32 %s2796_s12, 4  ;;  %s2797_s15 = smov [#allocation13]   ;;  %s82_s4 = int_to_ptr.vmem [resolvable:$true] %s81_s4 }
  0x16   :  { %87 = dma.hbm_to_vmem [thread:$0]  %s80_s27, 1024, %s82_s4, [#allocation9], %s2786_s25, %s2786_s25, %s2787_s26  }
  0x17   :  { %s111_s16 = sshll.u32 %s2797_s15, 4  ;;  %s112_s16 = int_to_ptr.vmem [resolvable:$true] %s111_s16 }
  0x18   :  { %117 = dma.hbm_to_vmem [thread:$0]  %s110_s14, 256, %s112_s16, [#allocation12], %s2786_s25, %s2786_s25, %s2787_s26  }
  0x19   :  { %2775 = dma.done.wait [#allocation3], 256  }
  0x1a   :  { %2776 = vsyncadd [#allocation3], 4294967040 }
  0x1b   :  { %2777 = dma.done.wait [#allocation6], 7424  }
  0x1c   :  { %2778 = vsyncadd [#allocation6], 4294959872 }
  0x1d   :  { %2779 = dma.done.wait [#allocation9], 1136  }
  0x1e   :  { %2780 = vsyncadd [#allocation9], 4294966160 }
  0x1f   :  { %2781 = dma.done.wait [#allocation12], 768  }
  0x20   :  { %2782 = vsyncadd [#allocation12], 4294966528  ;;  %v2798_v0 = vmov 8.0   ;;  %vm176_vm0 = vcmask 80896   ;;  %v174_v2 = vld [vmem:[#allocation5] sm:$0xff]  ;;  %v175_v3 = vld [vmem:[#allocation5 + $0x8] sm:$0xff] }
  0x21   :  { %2440 = vrcp.f32 %v2798_v0  ;;  %v2356_v4 = vld [vmem:[#allocation7 + $0x38] sm:$0xff]  ;;  %v177_v6 = vsel %vm176_vm0, %v174_v2, 0.0  ;;  %v184_v7 = vsel %vm176_vm0, %v175_v3, 0.0  ;;  %v2355_v10 = vld [vmem:[#allocation7 + $0x30] sm:$0xff]  ;;  %v2354_v14 = vld [vmem:[#allocation7 + $0x28] sm:$0xff]  ;;  %vm195_vm2 = vcmask 1041409  }
  0x22   :  { %v178_v8 = vrot.slane %v177_v6, 4  ;;  %v185_v9 = vrot.slane %v184_v7, 4  ;;  %276 = vmatpush.bf16.msra.mxu0 %v2356_v4  ;;  %v2353_v23 = vld [vmem:[#allocation7 + $0x20] sm:$0xff]  ;;  %v2352_v29 = vld [vmem:[#allocation7 + $0x18] sm:$0xff]  ;;  %v2351_v31 = vld [vmem:[#allocation7 + $0x10] sm:$0xff]  ;;  %vm150_vm3 = vcmask 130048  }
  0x23   :  { %v2350_v32 = vld [vmem:[#allocation7 + $0x8] sm:$0xff]  ;;  %v148_v33 = vld [vmem:[#allocation2] sm:$0xff]  ;;  %v2364_v40 = vld [vmem:[#allocation7 + $0x78] sm:$0xff]  ;;  %vm205_vm4 = vcmask 211968   ;;  %vm864_vm10 = vcmask 1041408   ;;  %vm845_vm11 = vcmask 7168  }
  0x24   :  { %v179_v12 = vadd.f32 %v178_v8, %v177_v6  ;;  %v186_v13 = vadd.f32 %v185_v9, %v184_v7  ;;  %v149_v34 = vld [vmem:[#allocation2 + $0x8] sm:$0xff]  ;;  %v151_v35 = vsel %vm150_vm3, %v148_v33, 0.0  ;;  %v2349_v37 = vld [vmem:[#allocation7] sm:$0xff]  ;;  %361 = vmatpush.bf16.msra.mxu1 %v2364_v40  ;;  %v2363_v43 = vld [vmem:[#allocation7 + $0x70] sm:$0xff]  ;;  %vm847_vm12 = vcmask 15360   ;;  %s2800_s25 = smov 32  }
  0x25   :  { %v158_v36 = vsel %vm150_vm3, %v149_v34, 0.0  ;;  %v152_v38 = vrot.slane %v151_v35, 4  ;;  %v2362_v46 = vld [vmem:[#allocation7 + $0x68] sm:$0xff]  ;;  %v2361_v49 = vld [vmem:[#allocation7 + $0x60] sm:$0xff]  ;;  %v2360_v52 = vld [vmem:[#allocation7 + $0x58] sm:$0xff]  ;;  %vm853_vm13 = vcmask 261120  }
  0x26   :  { %v180_v16 = vrot.slane %v179_v12, 2  ;;  %v187_v17 = vrot.slane %v186_v13, 2  ;;  %277 = vmatpush.bf16.msra.mxu0 %v2355_v10  ;;  %v159_v39 = vrot.slane %v158_v36, 4  ;;  %v2359_v55 = vld [vmem:[#allocation7 + $0x50] sm:$0xff]  ;;  %vm2119_vm5 = vmpackc.low %vm205_vm4, %vm205_vm4  ;;  %v2358_v62 = vld [vmem:[#allocation7 + $0x48] sm:$0xff]  ;;  %vm855_vm14 = vcmask 343040  }
  0x27   :  { %v2441_v1 = vpop.eup %2440  ;;  %v153_v41 = vadd.f32 %v152_v38, %v151_v35  ;;  %v2357_v63 = vld [vmem:[#allocation7 + $0x40] sm:$0xff]  ;;  %v2372_v0 = vld [vmem:[#allocation7 + $0xb8] sm:$0xff]  ;;  %v2370_v2 = vld [vmem:[#allocation7 + $0xa8] sm:$0xff]  ;;  %vm860_vm15 = vcmask 474112   ;;  %s2801_s17 = smov 96   ;;  %s2802_s18 = smov 80  }
  0x28   :  { %v166_v5 = vmul.f32 8.0, %v2441_v1  ;;  %vm170_vm1 = vweird.f32 %v2441_v1  ;;  %v181_v19 = vadd.f32 %v180_v16, %v179_v12  ;;  %v188_v20 = vadd.f32 %v187_v17, %v186_v13  ;;  %362 = vmatpush.bf16.msra.mxu1 %v2363_v43  ;;  %446 = vmatpush.bf16.msra.mxu2 %v2372_v0  ;;  %v2369_v3 = vld [vmem:[#allocation7 + $0xa0] sm:$0xff]  ;;  %v2368_v4 = vld [vmem:[#allocation7 + $0x98] sm:$0xff]  ;;  %v2366_v12 = vld [vmem:[#allocation7 + $0x88] sm:$0xff]  ;;  %s2803_s21 = smov 112   ;;  %s2074_s27 = sshll.u32 %s3228_s11, 4  ;;  %s2075_s27 = int_to_ptr.hbm [resolvable:$true] %s2074_s27 }
  0x29   :  { %v160_v42 = vadd.f32 %v159_v39, %v158_v36  ;;  %v154_v44 = vrot.slane %v153_v41, 2  ;;  %v2430_v6 = vld [vmem:[#allocation8] ss:$0 sm:$0xff]  ;;  %v2378_v16 = vld [vmem:[#allocation7 + $0xe8] sm:$0xff]  ;;  %v2383_v33 = vld [vmem:[#allocation7 + $0x110] sm:$0xff] }
  0x2a   :  { %v167_v11 = vsub.f32 1.0, %v166_v5  ;;  %v182_v21 = vrot.slane %v181_v19, 1  ;;  %v189_v22 = vrot.slane %v188_v20, 1  ;;  %278 = vmatpush.bf16.msra.mxu0 %v2354_v14  ;;  %v2367_v5 = vld [vmem:[#allocation7 + $0x90] sm:$0xff]  ;;  %v2365_v13 = vld [vmem:[#allocation7 + $0x80] sm:$0xff]  ;;  %v2380_v14 = vld [vmem:[#allocation7 + $0xf8] sm:$0xff] }
  0x2b   :  { %v161_v45 = vrot.slane %v160_v42, 2  ;;  %v155_v47 = vadd.f32 %v154_v44, %v153_v41  ;;  %531 = vmatpush.bf16.msra.mxu3 %v2380_v14  ;;  %v2377_v17 = vld [vmem:[#allocation7 + $0xe0] sm:$0xff]  ;;  %v2382_v40 = vld [vmem:[#allocation7 + $0x108] sm:$0xff]  ;;  %v2395_v43 = vld [vmem:[#allocation7 + $0x170] sm:$0xff] }
  0x2c   :  { %v168_v15 = vmul.f32 %v2441_v1, %v167_v11  ;;  %v183_v25 = vadd.f32 %v182_v21, %v181_v19  ;;  %v190_v26 = vadd.f32 %v189_v22, %v188_v20  ;;  %363 = vmatpush.bf16.msra.mxu1 %v2362_v46  ;;  %v2375_v19 = vld [vmem:[#allocation7 + $0xd0] sm:$0xff]  ;;  %v2431_v20 = vld [vmem:[#allocation8 + $0x1] ss:$0 sm:$0xff]  ;;  %v2432_v34 = vld [vmem:[#allocation8 + $0x2] ss:$0 sm:$0xff] }
  0x2d   :  { %v162_v48 = vadd.f32 %v161_v45, %v160_v42  ;;  %v156_v50 = vrot.slane %v155_v47, 1  ;;  %v2381_v41 = vld [vmem:[#allocation7 + $0x100] sm:$0xff]  ;;  %v2396_v42 = vld [vmem:[#allocation7 + $0x178] sm:$0xff]  ;;  %v2394_v44 = vld [vmem:[#allocation7 + $0x168] sm:$0xff] }
  0x2e   :  { %v169_v18 = vadd.f32 %v2441_v1, %v168_v15  ;;  %279 = vmatpush.bf16.msra.mxu0 %v2353_v23  ;;  %v2379_v15 = vld [vmem:[#allocation7 + $0xf0] sm:$0xff]  ;;  %v2393_v45 = vld [vmem:[#allocation7 + $0x160] sm:$0xff]  ;;  %v2392_v46 = vld [vmem:[#allocation7 + $0x158] sm:$0xff] }
  0x2f   :  { %v163_v51 = vrot.slane %v162_v48, 1  ;;  %v157_v53 = vadd.f32 %v156_v50, %v155_v47  ;;  %532 = vmatpush.bf16.msra.mxu3 %v2379_v15  ;;  %v2391_v47 = vld [vmem:[#allocation7 + $0x150] sm:$0xff] }
  0x30   :  { %v171_v24 = vsel %vm170_vm1, %v2441_v1, %v169_v18  ;;  %364 = vmatpush.bf16.msra.mxu1 %v2361_v49  ;;  %v2371_v1 = vld [vmem:[#allocation7 + $0xb0] sm:$0xff]  ;;  %v2376_v18 = vld [vmem:[#allocation7 + $0xd8] sm:$0xff] }
  0x31   :  { %v191_v27 = vmul.f32 %v183_v25, %v171_v24  ;;  %v192_v28 = vmul.f32 %v190_v26, %v171_v24  ;;  %v164_v54 = vadd.f32 %v163_v51, %v162_v48  ;;  %v172_v56 = vmul.f32 %v171_v24, %v157_v53  ;;  %447 = vmatpush.bf16.msra.mxu2 %v2371_v1  ;;  %v2374_v26 = vld [vmem:[#allocation7 + $0xc8] sm:$0xff]  ;;  %v2433_v48 = vld [vmem:[#allocation8 + $0x3] ss:$0 sm:$0xff] }
  0x32   :  { %280 = vmatpush.bf16.msra.mxu0 %v2352_v29  ;;  %v2387_v29 = vld [vmem:[#allocation7 + $0x130] sm:$0xff] }
  0x33   :  { %v200_v30 = vsel %vm195_vm2, %v192_v28, %v191_v27  ;;  %v173_v57 = vmul.f32 %v171_v24, %v164_v54  ;;  %533 = vmatpush.bf16.msra.mxu3 %v2378_v16  ;;  %v2373_v27 = vld [vmem:[#allocation7 + $0xc0] sm:$0xff]  ;;  %v2388_v28 = vld [vmem:[#allocation7 + $0x138] sm:$0xff]  ;;  %v2390_v54 = vld [vmem:[#allocation7 + $0x148] sm:$0xff] }
  0x34   :  { %201 = vrot.lane.b32.xlu0 %v200_v30, %s2789_s29  ;;  %365 = vmatpush.bf16.msra.mxu1 %v2360_v52  ;;  %v2386_v30 = vld [vmem:[#allocation7 + $0x128] sm:$0xff] }
  0x35   :  { %v196_v58 = vsel %vm195_vm2, %v173_v57, %v172_v56  ;;  %448 = vmatpush.bf16.msra.mxu2 %v2370_v2  ;;  %v2404_v56 = vld [vmem:[#allocation7 + $0x1b8] sm:$0xff]  ;;  %v2403_v57 = vld [vmem:[#allocation7 + $0x1b0] sm:$0xff] }
  0x36   :  { %281 = vmatpush.bf16.msra.mxu0 %v2351_v31  ;;  %v2385_v31 = vld [vmem:[#allocation7 + $0x120] sm:$0xff] }
  0x37   :  { %534 = vmatpush.bf16.msra.mxu3 %v2377_v17 }
  0x38   :  { %366 = vmatpush.bf16.msra.mxu1 %v2359_v55  ;;  %v2389_v55 = vld [vmem:[#allocation7 + $0x140] sm:$0xff] }
  0x39   :  { %449 = vmatpush.bf16.msra.mxu2 %v2369_v3 }
  0x3a   :  { %282 = vmatpush.bf16.msra.mxu0 %v2350_v32  ;;  %v2384_v32 = vld [vmem:[#allocation7 + $0x118] sm:$0xff] }
  0x3b   :  { %535 = vmatpush.bf16.msra.mxu3 %v2376_v18 }
  0x3c   :  { %367 = vmatpush.bf16.msra.mxu1 %v2358_v62  ;;  %v2434_v62 = vld [vmem:[#allocation8 + $0x4] ss:$0 sm:$0xff] }
  0x3d   :  { %450 = vmatpush.bf16.msra.mxu2 %v2368_v4  ;;  %v2398_v4 = vld [vmem:[#allocation7 + $0x188] sm:$0xff] }
  0x3e   :  { %283 = vmatpush.bf16.msra.mxu0 %v2349_v37 }
  0x3f   :  { %536 = vmatpush.bf16.msra.mxu3 %v2375_v19 }
  0x40   :  { %368 = vmatpush.bf16.msra.mxu1 %v2357_v63 }
  0x41   :  { %451 = vmatpush.bf16.msra.mxu2 %v2367_v5  ;;  %v2397_v5 = vld [vmem:[#allocation7 + $0x180] sm:$0xff] }
  0x42   :  { %616 = vmatpush.bf16.msrb.mxu0 %v2388_v28 }
  0x43   :  { %537 = vmatpush.bf16.msra.mxu3 %v2374_v26 }
  0x44   :  { %701 = vmatpush.bf16.msrb.mxu1 %v2396_v42 }
  0x45   :  { %452 = vmatpush.bf16.msra.mxu2 %v2366_v12  ;;  %v819_v12 = vld [vmem:[%s3219_s2] sm:$0x3]  ;;  %s2799_s2 = smov 2  }
  0x46   :  { %617 = vmatpush.bf16.msrb.mxu0 %v2387_v29  ;;  %838 = vrot.lane.b32.xlu0 %v819_v12, %s2790_s1  ;;  %v834_v12 = vld [vmem:[#allocation13] sm:$0xff] }
  0x47   :  { %538 = vmatpush.bf16.msra.mxu3 %v2373_v27 }
  0x48   :  { %702 = vmatpush.bf16.msrb.mxu1 %v2395_v43 }
  0x49   :  { %453 = vmatpush.bf16.msra.mxu2 %v2365_v13  ;;  %v2436_v13 = vld [vmem:[#allocation8 + $0x6] ss:$0 sm:$0xff] }
  0x4a   :  { %618 = vmatpush.bf16.msrb.mxu0 %v2386_v30 }
  0x4c   :  { %703 = vmatpush.bf16.msrb.mxu1 %v2394_v44 }
  0x4d   :  { %786 = vmatpush.bf16.msrb.mxu2 %v2404_v56 }
  0x4e   :  { %619 = vmatpush.bf16.msrb.mxu0 %v2385_v31  ;;  %v2916_v31 = vld [vmem:[#allocation10 + $0x38] sm:$0x3] }
  0x4f   :  { %2315 = vmatpush.msk.msrb.mxu3 %vm864_vm10, %v2916_v31 }
  0x50   :  { %704 = vmatpush.bf16.msrb.mxu1 %v2393_v45 }
  0x51   :  { %787 = vmatpush.bf16.msrb.mxu2 %v2403_v57 }
  0x52   :  { %620 = vmatpush.bf16.msrb.mxu0 %v2384_v32  ;;  %v2918_v32 = vld [vmem:[#allocation10 + $0x30] sm:$0xff] }
  0x53   :  { %877 = vmatpush.msrb.mxu3 %v2918_v32 }
  0x54   :  { %705 = vmatpush.bf16.msrb.mxu1 %v2392_v46 }
  0x56   :  { %621 = vmatpush.bf16.msrb.mxu0 %v2383_v33  ;;  %v2924_v33 = vld [vmem:[#allocation10 + $0x28] sm:$0xff] }
  0x57   :  { %878 = vmatpush.msrb.mxu3 %v2924_v33 }
  0x58   :  { %706 = vmatpush.bf16.msrb.mxu1 %v2391_v47 }
  0x5a   :  { %622 = vmatpush.bf16.msrb.mxu0 %v2382_v40 }
  0x5c   :  { %707 = vmatpush.bf16.msrb.mxu1 %v2390_v54 }
  0x5e   :  { %623 = vmatpush.bf16.msrb.mxu0 %v2381_v41 }
  0x60   :  { %708 = vmatpush.bf16.msrb.mxu1 %v2389_v55 }
  0xa6   :  { %v202_v59 = vpop.permute.xlu0 %201 }
  0xa7   :  { %v204_v60 = vsel %vm150_vm3, %v196_v58, %v202_v59  ;;  %v2402_v58 = vld [vmem:[#allocation7 + $0x1a8] sm:$0xff]  ;;  %v2401_v59 = vld [vmem:[#allocation7 + $0x1a0] sm:$0xff] }
  0xa8   :  { %v2120_v61 = vpack.c.bf16 %v204_v60, %v204_v60  ;;  %788 = vmatpush.bf16.msrb.mxu2 %v2402_v58  ;;  %v2400_v60 = vld [vmem:[#allocation7 + $0x198] sm:$0xff] }
  0xaa   :  { %2121 = vmatmul.msk.bf16.vlgmr.msra.gmra.mxu0 %vm2119_vm5, %v2120_v61  ;;  %v2399_v61 = vld [vmem:[#allocation7 + $0x190] sm:$0xff] }
  0xab   :  { %2325 = vmatpush.msk.msra.mxu0 %vm864_vm10, %v2916_v31 }
  0xac   :  { %789 = vmatpush.bf16.msrb.mxu2 %v2401_v59 }
  0xad   :  { %1173 = vmatpush.msra.mxu0 %v2918_v32 }
  0xaf   :  { %1174 = vmatpush.msra.mxu0 %v2924_v33 }
  0xb0   :  { %790 = vmatpush.bf16.msrb.mxu2 %v2400_v60 }
  0xb4   :  { %791 = vmatpush.bf16.msrb.mxu2 %v2399_v61 }
  0xb8   :  { %792 = vmatpush.bf16.msrb.mxu2 %v2398_v4 }
  0xbc   :  { %793 = vmatpush.bf16.msrb.mxu2 %v2397_v5 }
 0x127   :  { %v285_v7 = vpop.f32.mrf.mxu0 }
 0x128   :  { %v286_v8 = vadd.f32 %v2430_v6, %v285_v7  ;;  %v2435_v6 = vld [vmem:[#allocation8 + $0x5] ss:$0 sm:$0xff] }
 0x12a   :  { %v289_v9 = vmax.f32 %v286_v8, 0.0 }
 0x12c   :  { %v309_v10 = vpack.c.bf16 %v289_v9, %v289_v9 }
 0x12e   :  { %369 = vmatmul.bf16.vlgmr.msra.gmra.mxu1 %v309_v10 }
 0x12f   :  { %v287_v11 = vpop.f32.mrf.mxu0 }
 0x1ab   :  { %v370_v21 = vpop.f32.mrf.mxu1 }
 0x1ac   :  { %v371_v22 = vadd.f32 %v2431_v20, %v370_v21 }
 0x1ae   :  { %v374_v23 = vmax.f32 %v371_v22, 0.0 }
 0x1b0   :  { %v394_v24 = vpack.c.bf16 %v374_v23, %v374_v23 }
 0x1b2   :  { %454 = vmatmul.bf16.vlgmr.msra.gmra.mxu2 %v394_v24 }
 0x1b3   :  { %v372_v25 = vpop.f32.mrf.mxu1  ;;  %2335 = vmatpush.msk.msra.mxu2 %vm864_vm10, %v2916_v31 }
 0x1b5   :  { %1579 = vmatpush.msra.mxu2 %v2918_v32 }
 0x1b7   :  { %1580 = vmatpush.msra.mxu2 %v2924_v33 }
 0x235   :  { %v455_v35 = vpop.f32.mrf.mxu2 }
 0x236   :  { %v456_v36 = vadd.f32 %v2432_v34, %v455_v35  ;;  %v2930_v34 = vld [vmem:[#allocation10 + $0x20] sm:$0xff]  ;;  %v2935_v35 = vld [vmem:[#allocation10 + $0x18] sm:$0xff] }
 0x237   :  { %879 = vmatpush.msrb.mxu3 %v2930_v34  ;;  %1175 = vmatpush.msra.mxu0 %v2930_v34 }
 0x238   :  { %v459_v37 = vmax.f32 %v456_v36, 0.0  ;;  %v2940_v36 = vld [vmem:[#allocation10 + $0x10] sm:$0xff]  ;;  %1581 = vmatpush.msra.mxu2 %v2930_v34 }
 0x239   :  { %880 = vmatpush.msrb.mxu3 %v2935_v35  ;;  %1176 = vmatpush.msra.mxu0 %v2935_v35 }
 0x23a   :  { %v479_v38 = vpack.c.bf16 %v459_v37, %v459_v37  ;;  %v2945_v37 = vld [vmem:[#allocation10 + $0x8] sm:$0xff]  ;;  %1582 = vmatpush.msra.mxu2 %v2935_v35 }
 0x23b   :  { %881 = vmatpush.msrb.mxu3 %v2940_v36  ;;  %1177 = vmatpush.msra.mxu0 %v2940_v36 }
 0x23c   :  { %539 = vmatmul.bf16.vlgmr.msra.gmra.mxu3 %v479_v38  ;;  %1583 = vmatpush.msra.mxu2 %v2940_v36  ;;  %v839_v38 = vpop.permute.xlu0 %838 }
 0x23d   :  { %v457_v39 = vpop.f32.mrf.mxu2  ;;  %882 = vmatpush.msrb.mxu3 %v2945_v37  ;;  %1178 = vmatpush.msra.mxu0 %v2945_v37  ;;  %v1137_v40 = vsel %vm845_vm11, 1.0, %v839_v38  ;;  %v1545_v41 = vsel %vm845_vm11, 2.0, %v839_v38  ;;  %v1948_v42 = vsel %vm845_vm11, 3.0, %v839_v38 }
 0x23e   :  { %1584 = vmatpush.msra.mxu2 %v2945_v37  ;;  %v846_v39 = vsel %vm845_vm11, 0.0, %v839_v38 }
 0x2bf   :  { %v540_v49 = vpop.f32.mrf.mxu3 }
 0x2c0   :  { %v541_v50 = vadd.f32 %v2433_v48, %v540_v49  ;;  %v2961_v48 = vld [vmem:[#allocation10] sm:$0xff] }
 0x2c1   :  { %883 = vmatpush.msrb.mxu3 %v2961_v48  ;;  %1179 = vmatpush.msra.mxu0 %v2961_v48 }
 0x2c2   :  { %v544_v51 = vmax.f32 %v541_v50, 0.0  ;;  %1585 = vmatpush.msra.mxu2 %v2961_v48 }
 0x2c4   :  { %v564_v52 = vpack.c.bf16 %v544_v51, %v544_v51 }
 0x2c6   :  { %624 = vmatmul.bf16.vlgmr.msrb.gmra.mxu0 %v564_v52  ;;  %v2972_v52 = vld [vmem:[%s3223_s6] ss:$0 sm:$0xff] }
 0x2c7   :  { %v542_v53 = vpop.f32.mrf.mxu3 }
 0x343   :  { %v625_v63 = vpop.f32.mrf.mxu0 }
 0x344   :  { %v626_v0 = vadd.f32 %v2434_v62, %v625_v63 }
 0x346   :  { %v629_v1 = vmax.f32 %v626_v0, 0.0 }
 0x348   :  { %v649_v2 = vpack.c.bf16 %v629_v1, %v629_v1 }
 0x34a   :  { %709 = vmatmul.bf16.vlgmr.msrb.gmra.mxu1 %v649_v2 }
 0x34b   :  { %v627_v3 = vpop.f32.mrf.mxu0 }
 0x3c7   :  { %v710_v7 = vpop.f32.mrf.mxu1 }
 0x3c8   :  { %v711_v8 = vadd.f32 %v2435_v6, %v710_v7 }
 0x3ca   :  { %v714_v9 = vmax.f32 %v711_v8, 0.0 }
 0x3cc   :  { %v734_v10 = vpack.c.bf16 %v714_v9, %v714_v9 }
 0x3ce   :  { %794 = vmatmul.bf16.vlgmr.msrb.gmra.mxu2 %v734_v10 }
 0x3cf   :  { %v712_v11 = vpop.f32.mrf.mxu1 }
 0x3d0   :  { %v835_v11 = vld [vmem:[#allocation13 + $0x8] sm:$0xff] }
 0x3d1   :  { %947 = vmatpush.msra.mxu3 %v835_v11 }
 0x3d3   :  { %948 = vmatpush.msra.mxu3 %v834_v12 }
 0x451   :  { %v795_v14 = vpop.f32.mrf.mxu2 }
 0x452   :  { %v796_v15 = vadd.f32 %v2436_v13, %v795_v14 }
 0x454   :  { %v799_v16 = vmax.f32 %v796_v15, 0.0  ;;  %v832_v15 = vld [vmem:[#allocation11 + $0x18] sm:$0xff] }
 0x455   :  { %1282 = vmatpush.msra.mxu1 %v832_v15  ;;  %1688 = vmatpush.msrb.mxu0 %v832_v15 }
 0x456   :  { %v2314_v17 = vmul.f32 -1.442695, %v799_v16  ;;  %v831_v16 = vld [vmem:[#allocation11 + $0x10] sm:$0xff] }
 0x457   :  { %1283 = vmatpush.msra.mxu1 %v831_v16  ;;  %1689 = vmatpush.msrb.mxu0 %v831_v16 }
 0x458   :  { %2442 = vpow2.f32 %v2314_v17  ;;  %v830_v17 = vld [vmem:[#allocation11 + $0x8] sm:$0xff] }
 0x459   :  { %v797_v18 = vpop.f32.mrf.mxu2  ;;  %1284 = vmatpush.msra.mxu1 %v830_v17  ;;  %1690 = vmatpush.msrb.mxu0 %v830_v17 }
 0x45a   :  { %v829_v18 = vld [vmem:[#allocation11] sm:$0xff] }
 0x45b   :  { %1285 = vmatpush.msra.mxu1 %v829_v18  ;;  %1691 = vmatpush.msrb.mxu0 %v829_v18 }
 0x45d   :  { %2345 = vmatpush.msk.msrb.mxu1 %vm864_vm10, %v2916_v31 }
 0x45e   :  { %v2443_v19 = vpop.eup %2442 }
 0x45f   :  { %v803_v20 = vadd.f32 1.0, %v2443_v19  ;;  %1982 = vmatpush.msrb.mxu1 %v2918_v32 }
 0x461   :  { %2444 = vrcp.f32 %v803_v20  ;;  %v815_v24 = vand.u32 2147483648, %v803_v20  ;;  %v813_v26 = vand.u32 2147483647, %v803_v20  ;;  %vm809_vm7 = vweird.f32 %v803_v20  ;;  %1983 = vmatpush.msrb.mxu1 %v2924_v33 }
 0x463   :  { %v816_v28 = vor.u32 1.1754944e-38, %v815_v24  ;;  %vm814_vm9 = vcmp.eq.f32.partialorder %v813_v26, 8.507059e+37  ;;  %1984 = vmatpush.msrb.mxu1 %v2930_v34  ;;  %v3009_v26 = vld [vmem:[%s3227_s10] ss:$0 sm:$0xff] }
 0x465   :  { %1985 = vmatpush.msrb.mxu1 %v2935_v35 }
 0x467   :  { %v2445_v21 = vpop.eup %2444  ;;  %1986 = vmatpush.msrb.mxu1 %v2940_v36 }
 0x468   :  { %v805_v22 = vmul.f32 %v2445_v21, %v803_v20  ;;  %vm810_vm6 = vweird.f32 %v2445_v21 }
 0x469   :  { %vm811_vm8 = vmor %vm809_vm7, %vm810_vm6  ;;  %1987 = vmatpush.msrb.mxu1 %v2945_v37  ;;  %vm1008_vm6 = vcmask 122880  }
 0x46a   :  { %v806_v23 = vsub.f32 1.0, %v805_v22  ;;  %v3001_v22 = vld [vmem:[%s3225_s8] ss:$0 sm:$0xff]  ;;  %s2804_s8 = smov 122  }
 0x46b   :  { %1988 = vmatpush.msrb.mxu1 %v2961_v48 }
 0x46c   :  { %v807_v25 = vmul.f32 %v2445_v21, %v806_v23 }
 0x46e   :  { %v808_v27 = vadd.f32 %v2445_v21, %v807_v25 }
 0x470   :  { %v812_v29 = vsel %vm811_vm8, %v2445_v21, %v808_v27 }
 0x471   :  { %v817_v30 = vsel %vm814_vm9, %v816_v28, %v812_v29 }
 0x472   :  { %842 = vrot.lane.b32.xlu1 %v817_v30, %s2799_s2 }
 0x4e4   :  { %v843_v43 = vpop.permute.xlu1 %842 }
 0x4e5   :  { %v848_v44 = vsel %vm847_vm12, %v846_v39, %v843_v43  ;;  %v2954_v45 = vsel %vm847_vm12, %v1137_v40, %v843_v43  ;;  %v2956_v46 = vsel %vm847_vm12, %v1545_v41, %v843_v43  ;;  %v2958_v47 = vsel %vm847_vm12, %v1948_v42, %v843_v43 }
 0x4e6   :  { %850 = vrot.lane.b32.xlu1 %v848_v44, %s2800_s25 }
 0x558   :  { %v851_v49 = vpop.permute.xlu1 %850 }
 0x559   :  { %v854_v50 = vsel %vm853_vm13, 0.0, %v851_v49 }
 0x55a   :  { %v856_v51 = vsel %vm855_vm14, %v854_v50, 0.0 }
 0x55b   :  { %2316 = vmatmul.msk.f32.vlgmr.msrb.gmra.mxu3 %vm860_vm15, %v856_v51 }
 0x55c   :  { %992 = vmatpush.msrb.mxu3 %v832_v15 }
 0x55e   :  { %993 = vmatpush.msrb.mxu3 %v831_v16 }
 0x560   :  { %994 = vmatpush.msrb.mxu3 %v830_v17 }
 0x562   :  { %995 = vmatpush.msrb.mxu3 %v829_v18 }
 0x5de   :  { %v885_v53 = vpop.f32.mrf.mxu3 }
 0x5df   :  { %v886_v54 = vadd.f32 %v2972_v52, %v885_v53 }
 0x5e1   :  { %2446 = vtanh.f32 %v886_v54  ;;  %v2317_v56 = vmul.f32 -1.442695, %v886_v54 }
 0x5e3   :  { %2448 = vpow2.f32 %v2317_v56 }
 0x5e7   :  { %v2447_v55 = vpop.eup %2446 }
 0x5e8   :  { %910 = vrot.lane.b32.xlu2 %v2447_v55, %s2801_s17 }
 0x5e9   :  { %v2449_v57 = vpop.eup %2448 }
 0x5ea   :  { %v891_v58 = vadd.f32 1.0, %v2449_v57 }
 0x5ec   :  { %2450 = vrcp.f32 %v891_v58  ;;  %v903_v0 = vand.u32 2147483648, %v891_v58  ;;  %vm897_vm1 = vweird.f32 %v891_v58  ;;  %v901_v1 = vand.u32 2147483647, %v891_v58 }
 0x5ee   :  { %v904_v3 = vor.u32 1.1754944e-38, %v903_v0  ;;  %vm902_vm5 = vcmp.eq.f32.partialorder %v901_v1, 8.507059e+37 }
 0x5f2   :  { %v2451_v59 = vpop.eup %2450 }
 0x5f3   :  { %v893_v60 = vmul.f32 %v2451_v59, %v891_v58  ;;  %vm898_vm0 = vweird.f32 %v2451_v59 }
 0x5f4   :  { %vm899_vm4 = vmor %vm897_vm1, %vm898_vm0 }
 0x5f5   :  { %v894_v61 = vsub.f32 1.0, %v893_v60 }
 0x5f7   :  { %v895_v62 = vmul.f32 %v2451_v59, %v894_v61 }
 0x5f9   :  { %v896_v63 = vadd.f32 %v2451_v59, %v895_v62 }
 0x5fb   :  { %v900_v2 = vsel %vm899_vm4, %v2451_v59, %v896_v63 }
 0x5fc   :  { %v905_v5 = vsel %vm902_vm5, %v904_v3, %v900_v2 }
 0x5fd   :  { %v908_v7 = vmul.f32 0.0, %v905_v5 }
 0x642   :  { %v911_v4 = vpop.permute.xlu2 %910 }
 0x643   :  { %v913_v6 = vmul.f32 %v911_v4, %v905_v5 }
 0x645   :  { %915 = vrot.lane.b32.xlu2 %v913_v6, %s2789_s29 }
 0x69f   :  { %v916_v8 = vpop.permute.xlu2 %915 }
 0x6a0   :  { %v2977_v9 = vadd.f32 %v916_v8, %v908_v7 }
 0x6a2   :  { %2452 = vtanh.f32 %v2977_v9 }
 0x6a8   :  { %v2453_v10 = vpop.eup %2452 }
 0x6a9   :  { %921 = vrot.lane.b32.xlu0 %v2453_v10, %s2800_s25 }
 0x71b   :  { %v922_v13 = vpop.permute.xlu0 %921 }
 0x71c   :  { %v2981_v14 = vmul.f32 %v922_v13, %v905_v5 }
 0x71e   :  { %929 = vrot.lane.b32.xlu1 %v2981_v14, %s2802_s18 }
 0x790   :  { %v930_v19 = vpop.permute.xlu1 %929 }
 0x791   :  { %2318 = vmatmul.msk.f32.vlgmr.msra.gmra.mxu3 %vm150_vm3, %v930_v19  ;;  %v973_v20 = vsel %vm150_vm3, %v930_v19, %v2977_v9 }
 0x792   :  { %1240 = vmatpush.msra.mxu3 %v835_v11 }
 0x794   :  { %1241 = vmatpush.msra.mxu3 %v834_v12 }
 0x799   :  { %2320 = vmatmul.msk.f32.vlgmr.msrb.gmra.mxu3 %vm853_vm13, %v973_v20 }
 0x79a   :  { %1646 = vmatpush.msrb.mxu3 %v835_v11 }
 0x79c   :  { %1647 = vmatpush.msrb.mxu3 %v834_v12 }
 0x814   :  { %v950_v21 = vpop.f32.mrf.mxu3 }
 0x815   :  { %v3012_v27 = vadd.f32 %v3009_v26, %v950_v21 }
 0x817   :  { %v3015_v28 = vrot.slane %v3012_v27, 1 }
 0x81c   :  { %v997_v23 = vpop.f32.mrf.mxu3 }
 0x81d   :  { %v998_v24 = vadd.f32 %v3001_v22, %v997_v23 }
 0x81f   :  { %1053 = vrot.lane.b32.xlu0 %v998_v24, %s2803_s21  ;;  %v1004_v25 = vrot.slane %v998_v24, 1  ;;  %v1006_v37 = vmul.f32 %v998_v24, %v3012_v27 }
 0x821   :  { %1055 = vrot.lane.b32.xlu2 %v1004_v25, %s2803_s21  ;;  %v1007_v29 = vmul.f32 %v1004_v25, %v3015_v28  ;;  %v1009_v38 = vsel %vm1008_vm6, %v1006_v37, 0.0 }
 0x823   :  { %v1012_v30 = vsel %vm1008_vm6, %v1007_v29, 0.0 }
 0x849   :  { %1013 = vadd.xlane.f32.xlu0 %v1012_v30 }
 0x85d   :  { %1155 = vrot.lane.b32.xlu0 %v2981_v14, %s2804_s8 }
 0x87b   :  { %v1056_v31 = vpop.permute.xlu2 %1055 }
 0x87c   :  { %v1060_v32 = vmul.f32 %v1056_v31, %v3015_v28 }
 0x87e   :  { %v1064_v33 = vsel %vm1008_vm6, %v1060_v32, 0.0 }
 0x87f   :  { %1065 = vadd.xlane.f32.xlu1 %v1064_v33 }
 0x891   :  { %v1054_v34 = vpop.permute.xlu0 %1053 }
 0x892   :  { %v1059_v35 = vmul.f32 %v1054_v34, %v3012_v27 }
 0x894   :  { %v1061_v36 = vsel %vm1008_vm6, %v1059_v35, 0.0 }
 0x895   :  { %1062 = vadd.xlane.f32.xlu2 %v1061_v36 }
 0x89d   :  { %1010 = vadd.xlane.f32.xlu2 %v1009_v38 }
 0x8b5   :  { %1152 = vrot.lane.b32.xlu2 %v2954_v45, %s2800_s25 }
 0x8bc   :  { %v1014_v23 = vpop.xlane.xlu0 %1013 }
 0x8bd   :  { %v2322_v25 = vmul.f32 -1.442695, %v1014_v23 }
 0x8f2   :  { %v1066_v39 = vpop.xlane.xlu1 %1065 }
 0x8f3   :  { %v2324_v40 = vmul.f32 -1.442695, %v1066_v39 }
 0x8f5   :  { %2454 = vpow2.f32 %v2324_v40 }
 0x8fb   :  { %v2455_v41 = vpop.eup %2454 }
 0x8fc   :  { %v1074_v42 = vadd.f32 1.0, %v2455_v41 }
 0x8fe   :  { %2456 = vrcp.f32 %v1074_v42  ;;  %v1101_v54 = vand.u32 2147483648, %v1074_v42  ;;  %vm1095_vm8 = vweird.f32 %v1074_v42  ;;  %v1099_v55 = vand.u32 2147483647, %v1074_v42 }
 0x900   :  { %v1102_v57 = vor.u32 1.1754944e-38, %v1101_v54  ;;  %vm1100_vm11 = vcmp.eq.f32.partialorder %v1099_v55, 8.507059e+37 }
 0x904   :  { %v2457_v43 = vpop.eup %2456 }
 0x905   :  { %v1091_v44 = vmul.f32 %v2457_v43, %v1074_v42  ;;  %vm1096_vm7 = vweird.f32 %v2457_v43 }
 0x906   :  { %vm1097_vm9 = vmor %vm1095_vm8, %vm1096_vm7 }
 0x907   :  { %v1092_v48 = vsub.f32 1.0, %v1091_v44 }
 0x908   :  { %v1063_v49 = vpop.xlane.xlu2 %1062 }
 0x909   :  { %v1093_v50 = vmul.f32 %v2457_v43, %v1092_v48  ;;  %v2323_v51 = vmul.f32 -1.442695, %v1063_v49 }
 0x90b   :  { %2458 = vpow2.f32 %v2323_v51  ;;  %v1094_v53 = vadd.f32 %v2457_v43, %v1093_v50 }
 0x90d   :  { %v1098_v56 = vsel %vm1097_vm9, %v2457_v43, %v1094_v53 }
 0x90e   :  { %v1103_v59 = vsel %vm1100_vm11, %v1102_v57, %v1098_v56 }
 0x90f   :  { %v1118_v60 = vsub.f32 %v1103_v59, %v1103_v59 }
 0x910   :  { %v1011_v24 = vpop.xlane.xlu2 %1010 }
 0x911   :  { %v2459_v45 = vpop.eup %2458  ;;  %v1121_v63 = vmul.f32 1.442695, %v1118_v60  ;;  %v2321_v29 = vmul.f32 -1.442695, %v1011_v24 }
 0x912   :  { %v1073_v58 = vadd.f32 1.0, %v2459_v45 }
 0x914   :  { %2460 = vrcp.f32 %v1073_v58  ;;  %v1086_v1 = vand.u32 2147483648, %v1073_v58  ;;  %v1084_v3 = vand.u32 2147483647, %v1073_v58  ;;  %vm1080_vm0 = vweird.f32 %v1073_v58 }
 0x915   :  { %2462 = vpow2.f32 %v1121_v63 }
 0x916   :  { %v1087_v5 = vor.u32 1.1754944e-38, %v1086_v1  ;;  %vm1085_vm4 = vcmp.eq.f32.partialorder %v1084_v3, 8.507059e+37 }
 0x91a   :  { %v2461_v61 = vpop.eup %2460 }
 0x91b   :  { %v1076_v62 = vmul.f32 %v2461_v61, %v1073_v58  ;;  %vm1081_vm12 = vweird.f32 %v2461_v61  ;;  %v2463_v8 = vpop.eup %2462 }
 0x91c   :  { %vm1082_vm1 = vmor %vm1080_vm0, %vm1081_vm12  ;;  %2464 = vrcp.f32 %v2463_v8 }
 0x91d   :  { %v1077_v0 = vsub.f32 1.0, %v1076_v62 }
 0x91f   :  { %v1078_v2 = vmul.f32 %v2461_v61, %v1077_v0 }
 0x921   :  { %v1079_v4 = vadd.f32 %v2461_v61, %v1078_v2 }
 0x922   :  { %v2465_v12 = vpop.eup %2464 }
 0x923   :  { %v1083_v6 = vsel %vm1082_vm1, %v2461_v61, %v1079_v4  ;;  %v1128_v15 = vmul.f32 %v2465_v12, %v2463_v8  ;;  %v1153_v8 = vpop.permute.xlu2 %1152 }
 0x924   :  { %v1088_v7 = vsel %vm1085_vm4, %v1087_v5, %v1083_v6 }
 0x925   :  { %v1117_v10 = vsub.f32 %v1088_v7, %v1088_v7  ;;  %v1134_v16 = vmul.f32 %v1128_v15, %v3015_v28 }
 0x927   :  { %v1119_v11 = vmul.f32 1.442695, %v1117_v10  ;;  %v1146_v20 = vrot.slane %v1134_v16, 7 }
 0x929   :  { %2466 = vpow2.f32 %v1119_v11  ;;  %v1156_v11 = vpop.permute.xlu0 %1155 }
 0x92f   :  { %v2467_v13 = vpop.eup %2466 }
 0x930   :  { %2468 = vrcp.f32 %v2467_v13 }
 0x931   :  { %2470 = vpow2.f32 %v2322_v25 }
 0x932   :  { %2472 = vpow2.f32 %v2321_v29 }
 0x936   :  { %v2469_v17 = vpop.eup %2468 }
 0x937   :  { %v1127_v18 = vmul.f32 %v2469_v17, %v2467_v13  ;;  %v2471_v30 = vpop.eup %2470 }
 0x938   :  { %v2473_v31 = vpop.eup %2472  ;;  %v1022_v32 = vadd.f32 1.0, %v2471_v30 }
 0x939   :  { %v1133_v19 = vmul.f32 %v1127_v18, %v3012_v27  ;;  %v1021_v33 = vadd.f32 1.0, %v2473_v31 }
 0x93a   :  { %2474 = vrcp.f32 %v1022_v32  ;;  %v1049_v43 = vand.u32 2147483648, %v1022_v32  ;;  %vm1043_vm6 = vweird.f32 %v1022_v32  ;;  %v1047_v44 = vand.u32 2147483647, %v1022_v32 }
 0x93b   :  { %v1147_v21 = vsel %vm195_vm2, %v1146_v20, %v1133_v19  ;;  %2476 = vrcp.f32 %v1021_v33  ;;  %v1034_v49 = vand.u32 2147483648, %v1021_v33  ;;  %vm1028_vm9 = vweird.f32 %v1021_v33 }
 0x93c   :  { %1148 = vrot.lane.b32.xlu1 %v1147_v21, %s2789_s29  ;;  %v1032_v51 = vand.u32 2147483647, %v1021_v33  ;;  %v1050_v53 = vor.u32 1.1754944e-38, %v1049_v43  ;;  %vm1048_vm12 = vcmp.eq.f32.partialorder %v1047_v44, 8.507059e+37 }
 0x93d   :  { %v1035_v45 = vor.u32 1.1754944e-38, %v1034_v49 }
 0x93e   :  { %vm1033_vm0 = vcmp.eq.f32.partialorder %v1032_v51, 8.507059e+37 }
 0x940   :  { %v2475_v34 = vpop.eup %2474 }
 0x941   :  { %v2477_v35 = vpop.eup %2476  ;;  %v1039_v36 = vmul.f32 %v2475_v34, %v1022_v32  ;;  %vm1044_vm5 = vweird.f32 %v2475_v34 }
 0x942   :  { %v1024_v37 = vmul.f32 %v2477_v35, %v1021_v33  ;;  %vm1029_vm7 = vweird.f32 %v2477_v35  ;;  %vm1045_vm8 = vmor %vm1043_vm6, %vm1044_vm5 }
 0x943   :  { %v1040_v38 = vsub.f32 1.0, %v1039_v36  ;;  %vm1030_vm11 = vmor %vm1028_vm9, %vm1029_vm7  ;;  %vm1296_vm7 = vcmask 1040384  }
 0x944   :  { %v1025_v39 = vsub.f32 1.0, %v1024_v37 }
 0x945   :  { %v1041_v40 = vmul.f32 %v2475_v34, %v1040_v38 }
 0x946   :  { %v1026_v41 = vmul.f32 %v2477_v35, %v1025_v39 }
 0x947   :  { %v1042_v42 = vadd.f32 %v2475_v34, %v1041_v40 }
 0x948   :  { %v1027_v48 = vadd.f32 %v2477_v35, %v1026_v41 }
 0x949   :  { %v1046_v50 = vsel %vm1045_vm8, %v2475_v34, %v1042_v42  ;;  %vm1307_vm8 = vcmask 123904  }
 0x94a   :  { %v1031_v54 = vsel %vm1030_vm11, %v2477_v35, %v1027_v48  ;;  %v1051_v55 = vsel %vm1048_vm12, %v1050_v53, %v1046_v50 }
 0x94b   :  { %v1036_v56 = vsel %vm1033_vm0, %v1035_v45, %v1031_v54  ;;  %v1106_v57 = vsub.f32 %v1051_v55, %v1051_v55 }
 0x94c   :  { %v1105_v58 = vsub.f32 %v1036_v56, %v1036_v56 }
 0x94d   :  { %v1109_v59 = vmul.f32 1.442695, %v1106_v57 }
 0x94e   :  { %v1107_v60 = vmul.f32 1.442695, %v1105_v58 }
 0x94f   :  { %2478 = vpow2.f32 %v1109_v59 }
 0x950   :  { %2480 = vpow2.f32 %v1107_v60 }
 0x955   :  { %v2479_v61 = vpop.eup %2478 }
 0x956   :  { %v2481_v62 = vpop.eup %2480  ;;  %2482 = vrcp.f32 %v2479_v61 }
 0x957   :  { %2484 = vrcp.f32 %v2481_v62 }
 0x95c   :  { %v2483_v63 = vpop.eup %2482 }
 0x95d   :  { %v2485_v0 = vpop.eup %2484  ;;  %v1116_v1 = vmul.f32 %v2483_v63, %v2479_v61 }
 0x95e   :  { %v1115_v2 = vmul.f32 %v2485_v0, %v2481_v62 }
 0x95f   :  { %v1130_v3 = vmul.f32 %v1116_v1, %v3015_v28 }
 0x960   :  { %v1129_v4 = vmul.f32 %v1115_v2, %v3012_v27 }
 0x961   :  { %v1141_v5 = vrot.slane %v1130_v3, 7 }
 0x963   :  { %v1142_v7 = vsel %vm195_vm2, %v1141_v5, %v1129_v4 }
 0x9ae   :  { %v1149_v6 = vpop.permute.xlu1 %1148 }
 0x9af   :  { %v1158_v10 = vsel %vm150_vm3, %v1142_v7, %v1149_v6 }
 0x9b0   :  { %v1159_v12 = vsel %vm853_vm13, %v1158_v10, %v1153_v8 }
 0x9b1   :  { %v1160_v13 = vsel %vm855_vm14, %v1159_v12, %v1156_v11 }
 0x9b2   :  { %2326 = vmatmul.msk.f32.vlgmr.msra.gmra.mxu0 %vm860_vm15, %v1160_v13 }
 0xa2f   :  { %v1181_v15 = vpop.f32.mrf.mxu0 }
 0xa30   :  { %v1182_v16 = vadd.f32 %v2972_v52, %v1181_v15 }
 0xa32   :  { %2486 = vtanh.f32 %v1182_v16  ;;  %v2327_v18 = vmul.f32 -1.442695, %v1182_v16 }
 0xa34   :  { %2488 = vpow2.f32 %v2327_v18 }
 0xa38   :  { %v2487_v17 = vpop.eup %2486 }
 0xa39   :  { %1206 = vrot.lane.b32.xlu1 %v2487_v17, %s2801_s17 }
 0xa3a   :  { %v2489_v19 = vpop.eup %2488 }
 0xa3b   :  { %v1187_v20 = vadd.f32 1.0, %v2489_v19 }
 0xa3d   :  { %2490 = vrcp.f32 %v1187_v20  ;;  %v1199_v30 = vand.u32 2147483648, %v1187_v20  ;;  %vm1193_vm4 = vweird.f32 %v1187_v20  ;;  %v1197_v31 = vand.u32 2147483647, %v1187_v20 }
 0xa3f   :  { %v1200_v33 = vor.u32 1.1754944e-38, %v1199_v30  ;;  %vm1198_vm6 = vcmp.eq.f32.partialorder %v1197_v31, 8.507059e+37 }
 0xa43   :  { %v2491_v21 = vpop.eup %2490 }
 0xa44   :  { %v1189_v23 = vmul.f32 %v2491_v21, %v1187_v20  ;;  %vm1194_vm1 = vweird.f32 %v2491_v21 }
 0xa45   :  { %vm1195_vm5 = vmor %vm1193_vm4, %vm1194_vm1 }
 0xa46   :  { %v1190_v24 = vsub.f32 1.0, %v1189_v23 }
 0xa48   :  { %v1191_v25 = vmul.f32 %v2491_v21, %v1190_v24 }
 0xa4a   :  { %v1192_v29 = vadd.f32 %v2491_v21, %v1191_v25 }
 0xa4c   :  { %v1196_v32 = vsel %vm1195_vm5, %v2491_v21, %v1192_v29 }
 0xa4d   :  { %v1201_v35 = vsel %vm1198_vm6, %v1200_v33, %v1196_v32 }
 0xa4e   :  { %v1204_v37 = vmul.f32 %v1201_v35, %v2977_v9 }
 0xaab   :  { %v1207_v34 = vpop.permute.xlu1 %1206 }
 0xaac   :  { %v1209_v36 = vmul.f32 %v1207_v34, %v1201_v35 }
 0xaae   :  { %1211 = vrot.lane.b32.xlu0 %v1209_v36, %s2789_s29 }
 0xb20   :  { %v1212_v38 = vpop.permute.xlu0 %1211 }
 0xb21   :  { %v3040_v39 = vadd.f32 %v1212_v38, %v1204_v37 }
 0xb23   :  { %2492 = vtanh.f32 %v3040_v39 }
 0xb29   :  { %v2493_v40 = vpop.eup %2492 }
 0xb2a   :  { %1217 = vrot.lane.b32.xlu2 %v2493_v40, %s2800_s25  ;;  %v1406_v40 = vlaneseq }
 0xb84   :  { %v1218_v41 = vpop.permute.xlu2 %1217 }
 0xb85   :  { %v3044_v42 = vmul.f32 %v1218_v41, %v1201_v35 }
 0xb87   :  { %1222 = vrot.lane.b32.xlu1 %v3044_v42, %s2802_s18 }
 0xbf9   :  { %v1223_v43 = vpop.permute.xlu1 %1222 }
 0xbfa   :  { %v1266_v44 = vsel %vm150_vm3, %v1223_v43, %v3040_v39  ;;  %2328 = vmatmul.msk.f32.vlgmr.msra.gmra.mxu3 %vm150_vm3, %v1223_v43 }
 0xbfb   :  { %2330 = vmatmul.msk.f32.vlgmr.msra.gmra.mxu1 %vm853_vm13, %v1266_v44 }
 0xc78   :  { %v1287_v9 = vpop.f32.mrf.mxu1 }
 0xc79   :  { %v1288_v48 = vadd.f32 %v3001_v22, %v1287_v9 }
 0xc7b   :  { %v1300_v49 = vrot.slane %v1288_v48, 1  ;;  %v1301_v50 = vperm.slane %v1288_v48, 0 }
 0xc7d   :  { %v1302_v51 = vperm.slane %v1300_v49, 0  ;;  %1352 = vrot.lane.b32.xlu0 %v1301_v50, %s2803_s21  ;;  %v1243_v53 = vpop.f32.mrf.mxu3 }
 0xc7e   :  { %v1244_v54 = vadd.f32 %v3009_v26, %v1243_v53 }
 0xc7f   :  { %1354 = vrot.lane.b32.xlu2 %v1302_v51, %s2803_s21 }
 0xc80   :  { %v1292_v55 = vperm.slane %v1244_v54, 0  ;;  %v1291_v58 = vrot.slane %v1244_v54, 1 }
 0xc82   :  { %v3057_v45 = vsel %vm1296_vm7, %v3012_v27, %v1292_v55  ;;  %v1293_v59 = vperm.slane %v1291_v58, 0 }
 0xc83   :  { %v1305_v56 = vmul.f32 %v1301_v50, %v3057_v45 }
 0xc84   :  { %v3062_v60 = vsel %vm1296_vm7, %v3015_v28, %v1293_v59 }
 0xc85   :  { %v1308_v57 = vsel %vm1307_vm8, %v1305_v56, 0.0  ;;  %v1306_v2 = vmul.f32 %v1302_v51, %v3062_v60 }
 0xc87   :  { %v1311_v3 = vsel %vm1307_vm8, %v1306_v2, 0.0 }
 0xca8   :  { %1309 = vadd.xlane.f32.xlu2 %v1308_v57  ;;  %v3080_v57 = vand.u32 127, %v1406_v40 }
 0xcd9   :  { %v1355_v61 = vpop.permute.xlu2 %1354 }
 0xcda   :  { %v1359_v62 = vmul.f32 %v1355_v61, %v3062_v60 }
 0xcdc   :  { %v1363_v63 = vsel %vm1307_vm8, %v1359_v62, 0.0 }
 0xcdd   :  { %1364 = vadd.xlane.f32.xlu0 %v1363_v63 }
 0xcef   :  { %v1353_v0 = vpop.permute.xlu0 %1352 }
 0xcf0   :  { %v1358_v27 = vmul.f32 %v1353_v0, %v3057_v45 }
 0xcf2   :  { %v1360_v1 = vsel %vm1307_vm8, %v1358_v27, 0.0 }
 0xcf3   :  { %1361 = vadd.xlane.f32.xlu1 %v1360_v1 }
 0xcfb   :  { %1312 = vadd.xlane.f32.xlu1 %v1311_v3 }
 0xd1b   :  { %v1310_v5 = vpop.xlane.xlu2 %1309 }
 0xd1c   :  { %v2331_v6 = vmul.f32 -1.442695, %v1310_v5 }
 0xd50   :  { %v1365_v4 = vpop.xlane.xlu0 %1364 }
 0xd51   :  { %v2334_v28 = vmul.f32 -1.442695, %v1365_v4 }
 0xd53   :  { %2494 = vpow2.f32 %v2334_v28 }
 0xd54   :  { %2496 = vpow2.f32 %v2331_v6 }
 0xd59   :  { %v2495_v7 = vpop.eup %2494 }
 0xd5a   :  { %v1373_v8 = vadd.f32 1.0, %v2495_v7  ;;  %v2497_v10 = vpop.eup %2496 }
 0xd5b   :  { %v3070_v12 = vadd.f32 1.0, %v2497_v10 }
 0xd5c   :  { %2498 = vrcp.f32 %v1373_v8  ;;  %v1400_v35 = vand.u32 2147483648, %v1373_v8  ;;  %vm1394_vm11 = vweird.f32 %v1373_v8  ;;  %v1398_v37 = vand.u32 2147483647, %v1373_v8 }
 0xd5d   :  { %v1331_v59 = vand.u32 2147483647, %v3070_v12  ;;  %v1333_v61 = vand.u32 2147483648, %v3070_v12 }
 0xd5e   :  { %v1401_v48 = vor.u32 1.1754944e-38, %v1400_v35  ;;  %vm1399_vm4 = vcmp.eq.f32.partialorder %v1398_v37, 8.507059e+37 }
 0xd5f   :  { %v1334_v5 = vor.u32 1.1754944e-38, %v1333_v61 }
 0xd62   :  { %v2499_v15 = vpop.eup %2498 }
 0xd63   :  { %v1390_v16 = vmul.f32 %v2499_v15, %v1373_v8  ;;  %vm1395_vm9 = vweird.f32 %v2499_v15 }
 0xd64   :  { %vm1396_vm12 = vmor %vm1394_vm11, %vm1395_vm9  ;;  %vm1327_vm9 = vweird.f32 %v3070_v12  ;;  %vm1412_vm11 = vcmask 9216  }
 0xd65   :  { %v1391_v23 = vsub.f32 1.0, %v1390_v16 }
 0xd66   :  { %v1362_v11 = vpop.xlane.xlu1 %1361 }
 0xd67   :  { %v2333_v13 = vmul.f32 -1.442695, %v1362_v11  ;;  %v1392_v25 = vmul.f32 %v2499_v15, %v1391_v23 }
 0xd69   :  { %2500 = vpow2.f32 %v2333_v13  ;;  %v1393_v34 = vadd.f32 %v2499_v15, %v1392_v25 }
 0xd6a   :  { %2502 = vrcp.f32 %v3070_v12 }
 0xd6b   :  { %v1397_v9 = vsel %vm1396_vm12, %v2499_v15, %v1393_v34 }
 0xd6c   :  { %v1402_v53 = vsel %vm1399_vm4, %v1401_v48, %v1397_v9 }
 0xd6d   :  { %v1453_v0 = vperm.slane %v1402_v53, %v3080_v57 }
 0xd6e   :  { %v1313_v17 = vpop.xlane.xlu1 %1312 }
 0xd6f   :  { %v2501_v18 = vpop.eup %2500  ;;  %v2332_v19 = vmul.f32 -1.442695, %v1313_v17  ;;  %v2805_v17 = vmov 0  }
 0xd70   :  { %v1372_v20 = vadd.f32 1.0, %v2501_v18  ;;  %v3073_v21 = vpop.eup %2502  ;;  %2428 = vset.pattern.permute.xlu0 %v2805_v17  ;;  %2427 = vset.pattern.permute.xlu1 %v2805_v17 }
 0xd71   :  { %2504 = vpow2.f32 %v2332_v19  ;;  %v1323_v24 = vmul.f32 %v3073_v21, %v3070_v12  ;;  %vm1328_vm6 = vweird.f32 %v3073_v21  ;;  %2429 = vset.pattern.permute.xlu2 %v2805_v17 }
 0xd72   :  { %2506 = vrcp.f32 %v1372_v20  ;;  %v1385_v38 = vand.u32 2147483648, %v1372_v20  ;;  %v1383_v44 = vand.u32 2147483647, %v1372_v20  ;;  %vm1379_vm1 = vweird.f32 %v1372_v20  ;;  %vm1329_vm12 = vmor %vm1327_vm9, %vm1328_vm6 }
 0xd73   :  { %v1324_v31 = vsub.f32 1.0, %v1323_v24 }
 0xd74   :  { %v1386_v51 = vor.u32 1.1754944e-38, %v1385_v38  ;;  %vm1384_vm7 = vcmp.eq.f32.partialorder %v1383_v44, 8.507059e+37 }
 0xd75   :  { %v1325_v41 = vmul.f32 %v3073_v21, %v1324_v31 }
 0xd77   :  { %v2505_v29 = vpop.eup %2504  ;;  %v1326_v54 = vadd.f32 %v3073_v21, %v1325_v41 }
 0xd78   :  { %v2507_v30 = vpop.eup %2506  ;;  %v1321_v32 = vadd.f32 1.0, %v2505_v29 }
 0xd79   :  { %v1375_v33 = vmul.f32 %v2507_v30, %v1372_v20  ;;  %vm1380_vm0 = vweird.f32 %v2507_v30  ;;  %v1330_v27 = vsel %vm1329_vm12, %v3073_v21, %v1326_v54  ;;  %vm1712_vm12 = vcmask 124928  }
 0xd7a   :  { %2508 = vrcp.f32 %v1321_v32  ;;  %vm1381_vm5 = vmor %vm1379_vm1, %vm1380_vm0  ;;  %v1348_v1 = vand.u32 2147483648, %v1321_v32  ;;  %v1346_v4 = vand.u32 2147483647, %v1321_v32  ;;  %vm1332_vm1 = vcmp.eq.f32.partialorder %v1331_v59, 8.507059e+37 }
 0xd7b   :  { %v1376_v36 = vsub.f32 1.0, %v1375_v33  ;;  %vm1342_vm4 = vweird.f32 %v1321_v32  ;;  %v1335_v7 = vsel %vm1332_vm1, %v1334_v5, %v1330_v27 }
 0xd7c   :  { %v1349_v8 = vor.u32 1.1754944e-38, %v1348_v1  ;;  %vm1347_vm6 = vcmp.eq.f32.partialorder %v1346_v4, 8.507059e+37  ;;  %v1408_v12 = vperm.slane %v1335_v7, %v3080_v57 }
 0xd7d   :  { %v1377_v43 = vmul.f32 %v2507_v30, %v1376_v36 }
 0xd7f   :  { %v1378_v49 = vadd.f32 %v2507_v30, %v1377_v43 }
 0xd80   :  { %v2509_v50 = vpop.eup %2508 }
 0xd81   :  { %v1338_v55 = vmul.f32 %v2509_v50, %v1321_v32  ;;  %v1382_v56 = vsel %vm1381_vm5, %v2507_v30, %v1378_v49  ;;  %vm1343_vm0 = vweird.f32 %v2509_v50 }
 0xd82   :  { %v1387_v58 = vsel %vm1384_vm7, %v1386_v51, %v1382_v56  ;;  %vm1344_vm5 = vmor %vm1342_vm4, %vm1343_vm0 }
 0xd83   :  { %v1339_v62 = vsub.f32 1.0, %v1338_v55  ;;  %v1452_v63 = vperm.slane %v1387_v58, %v3080_v57 }
 0xd85   :  { %v1454_v2 = vsel %vm195_vm2, %v1453_v0, %v1452_v63  ;;  %v1340_v3 = vmul.f32 %v2509_v50, %v1339_v62 }
 0xd86   :  { %v1456_v28 = vsel %vm1412_vm11, %v1454_v2, -inf }
 0xd87   :  { %1457 = vmax.xlane.f32.xlu0 %v1456_v28  ;;  %v1341_v6 = vadd.f32 %v2509_v50, %v1340_v3 }
 0xd89   :  { %v1345_v10 = vsel %vm1344_vm5, %v2509_v50, %v1341_v6 }
 0xd8a   :  { %v1350_v11 = vsel %vm1347_vm6, %v1349_v8, %v1345_v10 }
 0xd8b   :  { %v1409_v13 = vperm.slane %v1350_v11, %v3080_v57 }
 0xd8d   :  { %v1410_v15 = vsel %vm195_vm2, %v1409_v13, %v1408_v12 }
 0xd8e   :  { %v1413_v16 = vsel %vm1412_vm11, %v1410_v15, -inf }
 0xd8f   :  { %1414 = vmax.xlane.f32.xlu2 %v1413_v16 }
 0xdfa   :  { %v1458_v18 = vpop.xlane.xlu0 %1457 }
 0xdfb   :  { %v1460_v19 = vperm.slane %v1458_v18, 0  ;;  %v1461_v20 = vperm.slane %v1458_v18, 1 }
 0xdfd   :  { %v1464_v21 = vsub.f32 %v1387_v58, %v1460_v19  ;;  %v1465_v23 = vsub.f32 %v1402_v53, %v1461_v20 }
 0xdff   :  { %v1466_v24 = vmul.f32 1.442695, %v1464_v21  ;;  %v1468_v25 = vmul.f32 1.442695, %v1465_v23 }
 0xe01   :  { %2510 = vpow2.f32 %v1466_v24 }
 0xe02   :  { %2512 = vpow2.f32 %v1468_v25  ;;  %v1415_v29 = vpop.xlane.xlu2 %1414 }
 0xe03   :  { %v1417_v30 = vperm.slane %v1415_v29, 0  ;;  %v1418_v31 = vperm.slane %v1415_v29, 1 }
 0xe05   :  { %v1421_v32 = vsub.f32 %v1335_v7, %v1417_v30  ;;  %v1422_v33 = vsub.f32 %v1350_v11, %v1418_v31 }
 0xe07   :  { %v2511_v34 = vpop.eup %2510  ;;  %v1423_v35 = vmul.f32 1.442695, %v1421_v32  ;;  %v1425_v36 = vmul.f32 1.442695, %v1422_v33 }
 0xe08   :  { %v2513_v37 = vpop.eup %2512  ;;  %1473 = vperm.xlu1 %2427, %v2511_v34  }
 0xe09   :  { %2514 = vpow2.f32 %v1423_v35  ;;  %1476 = vperm.xlu0 %2428, %v2513_v37  }
 0xe0a   :  { %2516 = vpow2.f32 %v1425_v36 }
 0xe0f   :  { %v2515_v38 = vpop.eup %2514 }
 0xe10   :  { %v2517_v40 = vpop.eup %2516  ;;  %1430 = vperm.xlu2 %2429, %v2515_v38  }
 0xe11   :  { %1433 = vperm.xlu1 %2427, %v2517_v40  }
 0xe6a   :  { %v1431_v50 = vpop.permute.xlu2 %1430 }
 0xe6b   :  { %v1435_v53 = vperm.slane %v1431_v50, %v3080_v57 }
 0xe7a   :  { %v1474_v41 = vpop.permute.xlu1 %1473 }
 0xe7b   :  { %v1477_v43 = vpop.permute.xlu0 %1476  ;;  %v1478_v44 = vperm.slane %v1474_v41, %v3080_v57 }
 0xe7c   :  { %v1479_v9 = vperm.slane %v1477_v43, %v3080_v57 }
 0xe7e   :  { %v1480_v48 = vsel %vm195_vm2, %v1479_v9, %v1478_v44 }
 0xe7f   :  { %v1482_v49 = vsel %vm1412_vm11, %v1480_v48, 0.0 }
 0xe80   :  { %1483 = vadd.xlane.f32.xlu2 %v1482_v49 }
 0xe83   :  { %v1434_v51 = vpop.permute.xlu1 %1433 }
 0xe84   :  { %v1436_v54 = vperm.slane %v1434_v51, %v3080_v57 }
 0xe86   :  { %v1437_v55 = vsel %vm195_vm2, %v1436_v54, %v1435_v53 }
 0xe87   :  { %v1439_v56 = vsel %vm1412_vm11, %v1437_v55, 0.0 }
 0xe88   :  { %1440 = vadd.xlane.f32.xlu1 %v1439_v56 }
 0xea1   :  { %1561 = vrot.lane.b32.xlu1 %v3044_v42, %s2804_s8 }
 0xef3   :  { %v1484_v58 = vpop.xlane.xlu2 %1483 }
 0xef4   :  { %2518 = vrcp.f32 %v1484_v58 }
 0xefa   :  { %v2519_v59 = vpop.eup %2518 }
 0xefb   :  { %v1487_v61 = vperm.slane %v2519_v59, 0  ;;  %v1441_v62 = vpop.xlane.xlu1 %1440  ;;  %v1488_v0 = vperm.slane %v2519_v59, 1 }
 0xefc   :  { %2520 = vrcp.f32 %v1441_v62 }
 0xefd   :  { %v1491_v63 = vmul.f32 %v2511_v34, %v1487_v61  ;;  %v1492_v27 = vmul.f32 %v2513_v37, %v1488_v0 }
 0xeff   :  { %1521 = vperm.xlu0 %2428, %v1491_v63  }
 0xf02   :  { %v2521_v1 = vpop.eup %2520 }
 0xf03   :  { %v1444_v2 = vperm.slane %v2521_v1, 0  ;;  %v1445_v4 = vperm.slane %v2521_v1, 1 }
 0xf05   :  { %v1448_v3 = vmul.f32 %v2515_v38, %v1444_v2  ;;  %v1449_v28 = vmul.f32 %v2517_v40, %v1445_v4 }
 0xf07   :  { %1526 = vperm.xlu0 %2428, %v1492_v27  }
 0xf0f   :  { %1495 = vperm.xlu0 %2428, %v1448_v3  }
 0xf13   :  { %v1562_v56 = vpop.permute.xlu1 %1561 }
 0xf17   :  { %1500 = vperm.xlu0 %2428, %v1449_v28  }
 0xf1f   :  { %1558 = vrot.lane.b32.xlu0 %v2956_v46, %s2800_s25 }
 0xf71   :  { %v1522_v5 = vpop.permute.xlu0 %1521 }
 0xf72   :  { %v1529_v6 = vmul.f32 %v1522_v5, %v3057_v45 }
 0xf74   :  { %v1531_v7 = vsel %vm1307_vm8, %v1529_v6, 0.0 }
 0xf75   :  { %v1532_v8 = vrot.slane %v1531_v7, 4 }
 0xf77   :  { %v1533_v10 = vadd.f32 %v1532_v8, %v1531_v7 }
 0xf79   :  { %v1527_v11 = vpop.permute.xlu0 %1526  ;;  %v1534_v13 = vrot.slane %v1533_v10, 2 }
 0xf7a   :  { %v1530_v12 = vmul.f32 %v1527_v11, %v3062_v60 }
 0xf7b   :  { %v1535_v17 = vadd.f32 %v1534_v13, %v1533_v10 }
 0xf7c   :  { %v1538_v15 = vsel %vm1307_vm8, %v1530_v12, 0.0 }
 0xf7d   :  { %v1539_v16 = vrot.slane %v1538_v15, 4  ;;  %v1536_v21 = vrot.slane %v1535_v17, 1 }
 0xf7f   :  { %v1540_v18 = vadd.f32 %v1539_v16, %v1538_v15  ;;  %v1537_v23 = vadd.f32 %v1536_v21, %v1535_v17 }
 0xf81   :  { %v1541_v19 = vrot.slane %v1540_v18, 2  ;;  %v1496_v29 = vpop.permute.xlu0 %1495 }
 0xf82   :  { %v1503_v32 = vmul.f32 %v1496_v29, %v3057_v45 }
 0xf83   :  { %v1542_v20 = vadd.f32 %v1541_v19, %v1540_v18 }
 0xf84   :  { %v1505_v34 = vsel %vm1307_vm8, %v1503_v32, 0.0 }
 0xf85   :  { %v1543_v46 = vrot.slane %v1542_v20, 1  ;;  %v1506_v36 = vrot.slane %v1505_v34, 4 }
 0xf87   :  { %v1544_v24 = vadd.f32 %v1543_v46, %v1542_v20  ;;  %v1507_v38 = vadd.f32 %v1506_v36, %v1505_v34 }
 0xf89   :  { %v1553_v25 = vsel %vm195_vm2, %v1544_v24, %v1537_v23  ;;  %v1501_v30 = vpop.permute.xlu0 %1500  ;;  %v1508_v41 = vrot.slane %v1507_v38, 2 }
 0xf8a   :  { %1554 = vrot.lane.b32.xlu2 %v1553_v25, %s2789_s29  ;;  %v1504_v31 = vmul.f32 %v1501_v30, %v3062_v60 }
 0xf8b   :  { %v1509_v44 = vadd.f32 %v1508_v41, %v1507_v38 }
 0xf8c   :  { %v1512_v33 = vsel %vm1307_vm8, %v1504_v31, 0.0 }
 0xf8d   :  { %v1513_v35 = vrot.slane %v1512_v33, 4  ;;  %v1510_v48 = vrot.slane %v1509_v44, 1 }
 0xf8f   :  { %v1514_v37 = vadd.f32 %v1513_v35, %v1512_v33  ;;  %v1511_v50 = vadd.f32 %v1510_v48, %v1509_v44 }
 0xf91   :  { %v1515_v40 = vrot.slane %v1514_v37, 2  ;;  %v1559_v54 = vpop.permute.xlu0 %1558 }
 0xf93   :  { %v1516_v43 = vadd.f32 %v1515_v40, %v1514_v37 }
 0xf95   :  { %v1517_v9 = vrot.slane %v1516_v43, 1 }
 0xf97   :  { %v1518_v49 = vadd.f32 %v1517_v9, %v1516_v43 }
 0xf99   :  { %v1549_v53 = vsel %vm195_vm2, %v1518_v49, %v1511_v50 }
 0xfe4   :  { %v1555_v51 = vpop.permute.xlu2 %1554 }
 0xfe5   :  { %v1564_v55 = vsel %vm150_vm3, %v1549_v53, %v1555_v51 }
 0xfe6   :  { %v1565_v58 = vsel %vm853_vm13, %v1564_v55, %v1559_v54 }
 0xfe7   :  { %v1566_v59 = vsel %vm855_vm14, %v1565_v58, %v1562_v56 }
 0xfe8   :  { %2336 = vmatmul.msk.f32.vlgmr.msra.gmra.mxu2 %vm860_vm15, %v1566_v59 }
0x106b   :  { %v1587_v61 = vpop.f32.mrf.mxu2 }
0x106c   :  { %v1588_v62 = vadd.f32 %v2972_v52, %v1587_v61 }
0x106e   :  { %2522 = vtanh.f32 %v1588_v62  ;;  %v2337_v0 = vmul.f32 -1.442695, %v1588_v62 }
0x1070   :  { %2524 = vpow2.f32 %v2337_v0 }
0x1074   :  { %v2523_v63 = vpop.eup %2522 }
0x1075   :  { %1612 = vrot.lane.b32.xlu0 %v2523_v63, %s2801_s17 }
0x1076   :  { %v2525_v27 = vpop.eup %2524 }
0x1077   :  { %v1593_v1 = vadd.f32 1.0, %v2525_v27 }
0x1079   :  { %2526 = vrcp.f32 %v1593_v1  ;;  %v1605_v6 = vand.u32 2147483648, %v1593_v1  ;;  %vm1599_vm7 = vweird.f32 %v1593_v1  ;;  %v1603_v7 = vand.u32 2147483647, %v1593_v1 }
0x107b   :  { %v1606_v8 = vor.u32 1.1754944e-38, %v1605_v6  ;;  %vm1604_vm11 = vcmp.eq.f32.partialorder %v1603_v7, 8.507059e+37 }
0x107f   :  { %v2527_v2 = vpop.eup %2526 }
0x1080   :  { %v1595_v3 = vmul.f32 %v2527_v2, %v1593_v1  ;;  %vm1600_vm8 = vweird.f32 %v2527_v2 }
0x1081   :  { %vm1601_vm9 = vmor %vm1599_vm7, %vm1600_vm8 }
0x1082   :  { %v1596_v4 = vsub.f32 1.0, %v1595_v3 }
0x1084   :  { %v1597_v28 = vmul.f32 %v2527_v2, %v1596_v4 }
0x1086   :  { %v1598_v5 = vadd.f32 %v2527_v2, %v1597_v28 }
0x1088   :  { %v1602_v52 = vsel %vm1601_vm9, %v2527_v2, %v1598_v5 }
0x1089   :  { %v1607_v11 = vsel %vm1604_vm11, %v1606_v8, %v1602_v52 }
0x108a   :  { %v1610_v13 = vmul.f32 %v1607_v11, %v3040_v39 }
0x10e7   :  { %v1613_v10 = vpop.permute.xlu0 %1612 }
0x10e8   :  { %v1615_v12 = vmul.f32 %v1613_v10, %v1607_v11 }
0x10ea   :  { %1617 = vrot.lane.b32.xlu0 %v1615_v12, %s2789_s29 }
0x115c   :  { %v1618_v15 = vpop.permute.xlu0 %1617 }
0x115d   :  { %v3125_v16 = vadd.f32 %v1618_v15, %v1610_v13 }
0x115f   :  { %2528 = vtanh.f32 %v3125_v16 }
0x1165   :  { %v2529_v17 = vpop.eup %2528 }
0x1166   :  { %1623 = vrot.lane.b32.xlu2 %v2529_v17, %s2800_s25 }
0x11c0   :  { %v1624_v18 = vpop.permute.xlu2 %1623 }
0x11c1   :  { %v3129_v19 = vmul.f32 %v1624_v18, %v1607_v11 }
0x11c3   :  { %1628 = vrot.lane.b32.xlu0 %v3129_v19, %s2802_s18 }
0x1235   :  { %v1629_v20 = vpop.permute.xlu0 %1628 }
0x1236   :  { %v1672_v21 = vsel %vm150_vm3, %v1629_v20, %v3125_v16  ;;  %2338 = vmatmul.msk.f32.vlgmr.msrb.gmra.mxu3 %vm150_vm3, %v1629_v20 }
0x1237   :  { %2340 = vmatmul.msk.f32.vlgmr.msrb.gmra.mxu0 %vm853_vm13, %v1672_v21 }
0x12b4   :  { %v1693_v39 = vpop.f32.mrf.mxu0 }
0x12b5   :  { %v1694_v46 = vadd.f32 %v3001_v22, %v1693_v39 }
0x12b7   :  { %v1705_v23 = vrot.slane %v1694_v46, 1  ;;  %v1706_v24 = vperm.slane %v1694_v46, 0 }
0x12b9   :  { %v1707_v25 = vperm.slane %v1705_v23, 0  ;;  %1757 = vrot.lane.b32.xlu1 %v1706_v24, %s2803_s21  ;;  %v1649_v29 = vpop.f32.mrf.mxu3 }
0x12ba   :  { %v1650_v30 = vadd.f32 %v3009_v26, %v1649_v29 }
0x12bb   :  { %1759 = vrot.lane.b32.xlu2 %v1707_v25, %s2803_s21 }
0x12bc   :  { %v1698_v31 = vperm.slane %v1650_v30, 0  ;;  %v1697_v34 = vrot.slane %v1650_v30, 1 }
0x12be   :  { %v3143_v32 = vsel %vm864_vm10, %v3057_v45, %v1698_v31  ;;  %v1699_v35 = vperm.slane %v1697_v34, 0 }
0x12bf   :  { %v1710_v33 = vmul.f32 %v1706_v24, %v3143_v32 }
0x12c0   :  { %v3149_v36 = vsel %vm864_vm10, %v3062_v60, %v1699_v35 }
0x12c1   :  { %v1713_v22 = vsel %vm1712_vm12, %v1710_v33, 0.0  ;;  %v1711_v43 = vmul.f32 %v1707_v25, %v3149_v36 }
0x12c3   :  { %v1716_v44 = vsel %vm1712_vm12, %v1711_v43, 0.0 }
0x12e4   :  { %1714 = vadd.xlane.f32.xlu2 %v1713_v22 }
0x1315   :  { %v1760_v37 = vpop.permute.xlu2 %1759 }
0x1316   :  { %v1764_v26 = vmul.f32 %v1760_v37, %v3149_v36 }
0x1318   :  { %v1768_v38 = vsel %vm1712_vm12, %v1764_v26, 0.0 }
0x1319   :  { %1769 = vadd.xlane.f32.xlu1 %v1768_v38 }
0x132b   :  { %v1758_v45 = vpop.permute.xlu1 %1757 }
0x132c   :  { %v1763_v40 = vmul.f32 %v1758_v45, %v3143_v32 }
0x132e   :  { %v1765_v41 = vsel %vm1712_vm12, %v1763_v40, 0.0 }
0x132f   :  { %1766 = vadd.xlane.f32.xlu0 %v1765_v41 }
0x1337   :  { %1717 = vadd.xlane.f32.xlu0 %v1716_v44 }
0x1357   :  { %v1715_v48 = vpop.xlane.xlu2 %1714 }
0x1358   :  { %v2341_v49 = vmul.f32 -1.442695, %v1715_v48 }
0x138c   :  { %v1770_v9 = vpop.xlane.xlu1 %1769 }
0x138d   :  { %v2344_v60 = vmul.f32 -1.442695, %v1770_v9 }
0x138f   :  { %2530 = vpow2.f32 %v2344_v60 }
0x1390   :  { %2532 = vpow2.f32 %v2341_v49 }
0x1395   :  { %v2531_v50 = vpop.eup %2530 }
0x1396   :  { %v1778_v51 = vadd.f32 1.0, %v2531_v50  ;;  %v2533_v53 = vpop.eup %2532 }
0x1397   :  { %v3157_v55 = vadd.f32 1.0, %v2533_v53 }
0x1398   :  { %2534 = vrcp.f32 %v1778_v51  ;;  %v1805_v8 = vand.u32 2147483648, %v1778_v51  ;;  %vm1799_vm0 = vweird.f32 %v1778_v51  ;;  %v1803_v11 = vand.u32 2147483647, %v1778_v51 }
0x1399   :  { %vm1732_vm11 = vweird.f32 %v3157_v55  ;;  %v1736_v31 = vand.u32 2147483647, %v3157_v55  ;;  %v1738_v33 = vand.u32 2147483648, %v3157_v55 }
0x139a   :  { %v1806_v20 = vor.u32 1.1754944e-38, %v1805_v8  ;;  %vm1804_vm6 = vcmp.eq.f32.partialorder %v1803_v11, 8.507059e+37  ;;  %v2319_v8 = vmul.f32 -1.442695, %v2981_v14 }
0x139b   :  { %v1739_v43 = vor.u32 1.1754944e-38, %v1738_v33 }
0x139e   :  { %v2535_v58 = vpop.eup %2534 }
0x139f   :  { %v1795_v59 = vmul.f32 %v2535_v58, %v1778_v51  ;;  %vm1800_vm10 = vweird.f32 %v2535_v58 }
0x13a0   :  { %vm1801_vm1 = vmor %vm1799_vm0, %vm1800_vm10  ;;  %vm1815_vm10 = vcmask 17408  }
0x13a1   :  { %v1796_v1 = vsub.f32 1.0, %v1795_v59 }
0x13a2   :  { %v1767_v54 = vpop.xlane.xlu0 %1766 }
0x13a3   :  { %v2343_v56 = vmul.f32 -1.442695, %v1767_v54  ;;  %v1797_v3 = vmul.f32 %v2535_v58, %v1796_v1 }
0x13a5   :  { %2536 = vpow2.f32 %v2343_v56  ;;  %v1798_v52 = vadd.f32 %v2535_v58, %v1797_v3 }
0x13a6   :  { %2538 = vrcp.f32 %v3157_v55 }
0x13a7   :  { %v1802_v18 = vsel %vm1801_vm1, %v2535_v58, %v1798_v52 }
0x13a8   :  { %v1807_v23 = vsel %vm1804_vm6, %v1806_v20, %v1802_v18 }
0x13a9   :  { %v1856_v35 = vperm.slane %v1807_v23, %v3080_v57 }
0x13aa   :  { %v1718_v61 = vpop.xlane.xlu0 %1717 }
0x13ab   :  { %v2537_v62 = vpop.eup %2536  ;;  %v2342_v63 = vmul.f32 -1.442695, %v1718_v61 }
0x13ac   :  { %v1777_v0 = vadd.f32 1.0, %v2537_v62  ;;  %v2539_v27 = vpop.eup %2538 }
0x13ad   :  { %2540 = vpow2.f32 %v2342_v63  ;;  %v1728_v2 = vmul.f32 %v2539_v27, %v3157_v55  ;;  %vm1733_vm7 = vweird.f32 %v2539_v27 }
0x13ae   :  { %2542 = vrcp.f32 %v1777_v0  ;;  %v1790_v12 = vand.u32 2147483648, %v1777_v0  ;;  %v1788_v17 = vand.u32 2147483647, %v1777_v0  ;;  %vm1784_vm5 = vweird.f32 %v1777_v0  ;;  %vm1734_vm0 = vmor %vm1732_vm11, %vm1733_vm7 }
0x13af   :  { %v1729_v5 = vsub.f32 1.0, %v1728_v2 }
0x13b0   :  { %v1791_v46 = vor.u32 1.1754944e-38, %v1790_v12  ;;  %vm1789_vm9 = vcmp.eq.f32.partialorder %v1788_v17, 8.507059e+37 }
0x13b1   :  { %v1730_v13 = vmul.f32 %v2539_v27, %v1729_v5 }
0x13b3   :  { %v2541_v4 = vpop.eup %2540  ;;  %v1731_v24 = vadd.f32 %v2539_v27, %v1730_v13 }
0x13b4   :  { %v2543_v28 = vpop.eup %2542  ;;  %v1726_v6 = vadd.f32 1.0, %v2541_v4 }
0x13b5   :  { %v1780_v7 = vmul.f32 %v2543_v28, %v1777_v0  ;;  %vm1785_vm4 = vweird.f32 %v2543_v28  ;;  %v1735_v37 = vsel %vm1734_vm0, %v2539_v27, %v1731_v24 }
0x13b6   :  { %2544 = vrcp.f32 %v1726_v6  ;;  %vm1786_vm8 = vmor %vm1784_vm5, %vm1785_vm4  ;;  %v1753_v26 = vand.u32 2147483648, %v1726_v6  ;;  %v1751_v40 = vand.u32 2147483647, %v1726_v6  ;;  %vm1737_vm4 = vcmp.eq.f32.partialorder %v1736_v31, 8.507059e+37 }
0x13b7   :  { %v1781_v10 = vsub.f32 1.0, %v1780_v7  ;;  %vm1747_vm5 = vweird.f32 %v1726_v6  ;;  %v1740_v9 = vsel %vm1737_vm4, %v1739_v43, %v1735_v37 }
0x13b8   :  { %v1754_v60 = vor.u32 1.1754944e-38, %v1753_v26  ;;  %v1811_v50 = vperm.slane %v1740_v9, %v3080_v57 }
0x13b9   :  { %v1782_v15 = vmul.f32 %v2543_v28, %v1781_v10 }
0x13bb   :  { %v1783_v21 = vadd.f32 %v2543_v28, %v1782_v15 }
0x13bc   :  { %v2545_v39 = vpop.eup %2544 }
0x13bd   :  { %v1743_v25 = vmul.f32 %v2545_v39, %v1726_v6  ;;  %v1787_v29 = vsel %vm1786_vm8, %v2543_v28, %v1783_v21  ;;  %vm1748_vm1 = vweird.f32 %v2545_v39  ;;  %vm1752_vm8 = vcmp.eq.f32.partialorder %v1751_v40, 8.507059e+37 }
0x13be   :  { %v1792_v30 = vsel %vm1789_vm9, %v1791_v46, %v1787_v29  ;;  %vm1749_vm6 = vmor %vm1747_vm5, %vm1748_vm1 }
0x13bf   :  { %v1744_v22 = vsub.f32 1.0, %v1743_v25  ;;  %v1855_v34 = vperm.slane %v1792_v30, %v3080_v57 }
0x13c1   :  { %v1857_v38 = vsel %vm195_vm2, %v1856_v35, %v1855_v34  ;;  %v1745_v45 = vmul.f32 %v2545_v39, %v1744_v22 }
0x13c2   :  { %v1859_v41 = vsel %vm1815_vm10, %v1857_v38, -inf }
0x13c3   :  { %1860 = vmax.xlane.f32.xlu1 %v1859_v41  ;;  %v1746_v44 = vadd.f32 %v2545_v39, %v1745_v45 }
0x13c5   :  { %v1750_v48 = vsel %vm1749_vm6, %v2545_v39, %v1746_v44 }
0x13c6   :  { %v1755_v49 = vsel %vm1752_vm8, %v1754_v60, %v1750_v48 }
0x13c7   :  { %v1812_v51 = vperm.slane %v1755_v49, %v3080_v57 }
0x13c9   :  { %v1813_v53 = vsel %vm195_vm2, %v1812_v51, %v1811_v50 }
0x13ca   :  { %v1816_v54 = vsel %vm1815_vm10, %v1813_v53, -inf }
0x13cb   :  { %1817 = vmax.xlane.f32.xlu2 %v1816_v54 }
0x1436   :  { %v1861_v55 = vpop.xlane.xlu1 %1860 }
0x1437   :  { %v1863_v56 = vperm.slane %v1861_v55, 0  ;;  %v1864_v58 = vperm.slane %v1861_v55, 1 }
0x1439   :  { %v1867_v59 = vsub.f32 %v1792_v30, %v1863_v56  ;;  %v1868_v61 = vsub.f32 %v1807_v23, %v1864_v58 }
0x143b   :  { %v1869_v62 = vmul.f32 1.442695, %v1867_v59  ;;  %v1871_v63 = vmul.f32 1.442695, %v1868_v61 }
0x143d   :  { %2546 = vpow2.f32 %v1869_v62 }
0x143e   :  { %2548 = vpow2.f32 %v1871_v63  ;;  %v1818_v0 = vpop.xlane.xlu2 %1817 }
0x143f   :  { %v1820_v27 = vperm.slane %v1818_v0, 0  ;;  %v1821_v1 = vperm.slane %v1818_v0, 1 }
0x1441   :  { %v1824_v2 = vsub.f32 %v1740_v9, %v1820_v27  ;;  %v1825_v3 = vsub.f32 %v1755_v49, %v1821_v1 }
0x1443   :  { %v2547_v4 = vpop.eup %2546  ;;  %v1826_v28 = vmul.f32 1.442695, %v1824_v2  ;;  %v1828_v5 = vmul.f32 1.442695, %v1825_v3 }
0x1444   :  { %v2549_v6 = vpop.eup %2548  ;;  %1876 = vperm.xlu0 %2428, %v2547_v4  }
0x1445   :  { %2550 = vpow2.f32 %v1826_v28  ;;  %1879 = vperm.xlu1 %2427, %v2549_v6  }
0x1446   :  { %2552 = vpow2.f32 %v1828_v5 }
0x1447   :  { %2554 = vpow2.f32 %v2319_v8 }
0x144b   :  { %v2551_v7 = vpop.eup %2550 }
0x144c   :  { %v2553_v52 = vpop.eup %2552  ;;  %1833 = vperm.xlu2 %2429, %v2551_v7  }
0x144d   :  { %1836 = vperm.xlu0 %2428, %v2553_v52   ;;  %v2555_v21 = vpop.eup %2554 }
0x144e   :  { %v956_v23 = vadd.f32 1.0, %v2555_v21 }
0x1450   :  { %2556 = vrcp.f32 %v956_v23  ;;  %v968_v22 = vand.u32 2147483648, %v956_v23  ;;  %vm962_vm9 = vweird.f32 %v956_v23  ;;  %v966_v34 = vand.u32 2147483647, %v956_v23 }
0x1452   :  { %v969_v35 = vor.u32 1.1754944e-38, %v968_v22  ;;  %vm967_vm0 = vcmp.eq.f32.partialorder %v966_v34, 8.507059e+37  ;;  %v2339_v22 = vmul.f32 -1.442695, %v3129_v19 }
0x1456   :  { %v2557_v25 = vpop.eup %2556 }
0x1457   :  { %v958_v29 = vmul.f32 %v2557_v25, %v956_v23  ;;  %vm963_vm7 = vweird.f32 %v2557_v25 }
0x1458   :  { %vm964_vm11 = vmor %vm962_vm9, %vm963_vm7 }
0x1459   :  { %v959_v30 = vsub.f32 1.0, %v958_v29 }
0x145b   :  { %v960_v31 = vmul.f32 %v2557_v25, %v959_v30 }
0x145d   :  { %v961_v33 = vadd.f32 %v2557_v25, %v960_v31 }
0x14a6   :  { %v1834_v18 = vpop.permute.xlu2 %1833 }
0x14a7   :  { %v1838_v39 = vperm.slane %v1834_v18, %v3080_v57 }
0x14b6   :  { %v1877_v10 = vpop.permute.xlu0 %1876 }
0x14b7   :  { %v1880_v11 = vpop.permute.xlu1 %1879  ;;  %v1881_v12 = vperm.slane %v1877_v10, %v3080_v57 }
0x14b8   :  { %v1882_v13 = vperm.slane %v1880_v11, %v3080_v57 }
0x14ba   :  { %v1883_v15 = vsel %vm195_vm2, %v1882_v13, %v1881_v12 }
0x14bb   :  { %v1885_v17 = vsel %vm1815_vm10, %v1883_v15, 0.0 }
0x14bc   :  { %1886 = vadd.xlane.f32.xlu1 %v1885_v17 }
0x14bf   :  { %v1837_v20 = vpop.permute.xlu0 %1836 }
0x14c0   :  { %v1839_v46 = vperm.slane %v1837_v20, %v3080_v57  ;;  %v965_v57 = vsel %vm964_vm11, %v2557_v25, %v961_v33 }
0x14c1   :  { %v970_v37 = vsel %vm967_vm0, %v969_v35, %v965_v57 }
0x14c2   :  { %v1840_v14 = vsel %vm195_vm2, %v1839_v46, %v1838_v39 }
0x14c3   :  { %v1842_v24 = vsel %vm1815_vm10, %v1840_v14, 0.0 }
0x14c4   :  { %1843 = vadd.xlane.f32.xlu2 %v1842_v24 }
0x14dc   :  { %1961 = vrot.lane.b32.xlu2 %v2958_v47, %s2800_s25 }
0x14e4   :  { %2050 = vrot.lane.b32.xlu2 %v970_v37, %s2802_s18 }
0x152f   :  { %v1887_v26 = vpop.xlane.xlu1 %1886 }
0x1530   :  { %2558 = vrcp.f32 %v1887_v26 }
0x1536   :  { %v2559_v38 = vpop.eup %2558 }
0x1537   :  { %v1890_v45 = vperm.slane %v2559_v38, 0  ;;  %v1844_v40 = vpop.xlane.xlu2 %1843  ;;  %v1891_v47 = vperm.slane %v2559_v38, 1  ;;  %v2582_v38 = vld [vmem:[%s3223_s6] ss:$0 sm:$0xff]  ;;  %s2806_s6 = smov [#allocation14]  }
0x1538   :  { %2560 = vrcp.f32 %v1844_v40 }
0x1539   :  { %v1894_v41 = vmul.f32 %v2547_v4, %v1890_v45  ;;  %v1895_v43 = vmul.f32 %v2549_v6, %v1891_v47  ;;  %2562 = vpow2.f32 %v2339_v22 }
0x153b   :  { %1924 = vperm.xlu0 %2428, %v1894_v41  }
0x153e   :  { %v2561_v44 = vpop.eup %2560 }
0x153f   :  { %v1847_v9 = vperm.slane %v2561_v44, 0  ;;  %v1848_v48 = vperm.slane %v2561_v44, 1  ;;  %v1962_v29 = vpop.permute.xlu2 %1961  ;;  %v2563_v34 = vpop.eup %2562 }
0x1540   :  { %v1655_v57 = vadd.f32 1.0, %v2563_v34 }
0x1541   :  { %v1851_v60 = vmul.f32 %v2551_v7, %v1847_v9  ;;  %v1852_v49 = vmul.f32 %v2553_v52, %v1848_v48 }
0x1542   :  { %2564 = vrcp.f32 %v1655_v57  ;;  %v1665_v44 = vand.u32 2147483647, %v1655_v57 }
0x1543   :  { %1929 = vperm.xlu0 %2428, %v1895_v43  }
0x1548   :  { %v2565_v35 = vpop.eup %2564 }
0x1549   :  { %v1657_v37 = vmul.f32 %v2565_v35, %v1655_v57 }
0x154b   :  { %1898 = vperm.xlu0 %2428, %v1851_v60   ;;  %v1658_v40 = vsub.f32 1.0, %v1657_v37 }
0x154d   :  { %v1659_v41 = vmul.f32 %v2565_v35, %v1658_v40 }
0x154f   :  { %v1660_v43 = vadd.f32 %v2565_v35, %v1659_v41 }
0x1553   :  { %1903 = vperm.xlu0 %2428, %v1852_v49  }
0x15ad   :  { %v1925_v50 = vpop.permute.xlu0 %1924 }
0x15ae   :  { %v1932_v51 = vmul.f32 %v1925_v50, %v3143_v32 }
0x15b0   :  { %v1934_v53 = vsel %vm1712_vm12, %v1932_v51, 0.0 }
0x15b1   :  { %v1935_v54 = vrot.slane %v1934_v53, 4 }
0x15b3   :  { %v1936_v55 = vadd.f32 %v1935_v54, %v1934_v53 }
0x15b5   :  { %v1930_v56 = vpop.permute.xlu0 %1929  ;;  %v1937_v59 = vrot.slane %v1936_v55, 2 }
0x15b6   :  { %v1933_v58 = vmul.f32 %v1930_v56, %v3149_v36 }
0x15b7   :  { %v1938_v63 = vadd.f32 %v1937_v59, %v1936_v55 }
0x15b8   :  { %v1941_v61 = vsel %vm1712_vm12, %v1933_v58, 0.0 }
0x15b9   :  { %v1942_v62 = vrot.slane %v1941_v61, 4  ;;  %v1939_v2 = vrot.slane %v1938_v63, 1 }
0x15bb   :  { %v1943_v0 = vadd.f32 %v1942_v62, %v1941_v61  ;;  %v1940_v4 = vadd.f32 %v1939_v2, %v1938_v63  ;;  %v2329_v2 = vmul.f32 -1.442695, %v3044_v42 }
0x15bd   :  { %v1944_v27 = vrot.slane %v1943_v0, 2  ;;  %v1899_v6 = vpop.permute.xlu0 %1898 }
0x15be   :  { %v1906_v8 = vmul.f32 %v1899_v6, %v3143_v32 }
0x15bf   :  { %v1945_v1 = vadd.f32 %v1944_v27, %v1943_v0 }
0x15c0   :  { %v1908_v11 = vsel %vm1712_vm12, %v1906_v8, 0.0 }
0x15c1   :  { %v1946_v3 = vrot.slane %v1945_v1, 1  ;;  %v1909_v13 = vrot.slane %v1908_v11, 4 }
0x15c3   :  { %v1947_v28 = vadd.f32 %v1946_v3, %v1945_v1  ;;  %v1910_v17 = vadd.f32 %v1909_v13, %v1908_v11 }
0x15c5   :  { %v1956_v5 = vsel %vm195_vm2, %v1947_v28, %v1940_v4  ;;  %v1904_v7 = vpop.permute.xlu0 %1903  ;;  %v1911_v20 = vrot.slane %v1910_v17, 2 }
0x15c6   :  { %1957 = vrot.lane.b32.xlu0 %v1956_v5, %s2789_s29  ;;  %v1907_v52 = vmul.f32 %v1904_v7, %v3149_v36 }
0x15c7   :  { %v1912_v39 = vadd.f32 %v1911_v20, %v1910_v17 }
0x15c8   :  { %v1915_v10 = vsel %vm1712_vm12, %v1907_v52, 0.0  ;;  %vm1666_vm12 = vcmp.eq.f32.partialorder %v1665_v44, 8.507059e+37 }
0x15c9   :  { %v1916_v12 = vrot.slane %v1915_v10, 4  ;;  %v1913_v14 = vrot.slane %v1912_v39, 1 }
0x15cb   :  { %v1917_v15 = vadd.f32 %v1916_v12, %v1915_v10  ;;  %v1914_v25 = vadd.f32 %v1913_v14, %v1912_v39 }
0x15cd   :  { %v1918_v18 = vrot.slane %v1917_v15, 2 }
0x15ce   :  { %1964 = vrot.lane.b32.xlu0 %v3129_v19, %s2804_s8  ;;  %v1667_v19 = vand.u32 2147483648, %v1655_v57 }
0x15cf   :  { %v1919_v21 = vadd.f32 %v1918_v18, %v1917_v15 }
0x15d0   :  { %v1668_v60 = vor.u32 1.1754944e-38, %v1667_v19 }
0x15d1   :  { %v1920_v46 = vrot.slane %v1919_v21, 1 }
0x15d3   :  { %v1921_v23 = vadd.f32 %v1920_v46, %v1919_v21 }
0x15d5   :  { %v1952_v36 = vsel %vm195_vm2, %v1921_v23, %v1914_v25  ;;  %vm1662_vm2 = vweird.f32 %v2565_v35 }
0x1638   :  { %v1958_v24 = vpop.permute.xlu0 %1957 }
0x1639   :  { %v1967_v32 = vsel %vm150_vm3, %v1952_v36, %v1958_v24 }
0x163a   :  { %v1968_v30 = vsel %vm853_vm13, %v1967_v32, %v1962_v29 }
0x1640   :  { %v1965_v31 = vpop.permute.xlu0 %1964 }
0x1641   :  { %v1969_v33 = vsel %vm855_vm14, %v1968_v30, %v1965_v31  ;;  %vm1661_vm14 = vweird.f32 %v1655_v57  ;;  %v2051_v30 = vpop.permute.xlu2 %2050 }
0x1642   :  { %2346 = vmatmul.msk.f32.vlgmr.msrb.gmra.mxu1 %vm860_vm15, %v1969_v33  ;;  %vm1663_vm15 = vmor %vm1661_vm14, %vm1662_vm2  ;;  %vm2063_vm14 = vcmask 392192  }
0x1643   :  { %v1664_v9 = vsel %vm1663_vm15, %v2565_v35, %v1660_v43 }
0x1644   :  { %v1669_v48 = vsel %vm1666_vm12, %v1668_v60, %v1664_v9  ;;  %vm2065_vm12 = vcmask 517120  }
0x16bf   :  { %v1990_v26 = vpop.f32.mrf.mxu1 }
0x16c0   :  { %v1991_v45 = vadd.f32 %v2582_v38, %v1990_v26 }
0x16c2   :  { %2566 = vtanh.f32 %v1991_v45  ;;  %v2347_v49 = vmul.f32 -1.442695, %v1991_v45 }
0x16c4   :  { %2568 = vpow2.f32 %v2347_v49 }
0x16c8   :  { %v2567_v47 = vpop.eup %2566 }
0x16c9   :  { %2015 = vrot.lane.b32.xlu1 %v2567_v47, %s2801_s17 }
0x16ca   :  { %v2569_v50 = vpop.eup %2568 }
0x16cb   :  { %v1996_v51 = vadd.f32 1.0, %v2569_v50 }
0x16cd   :  { %2570 = vrcp.f32 %v1996_v51  ;;  %v2008_v59 = vand.u32 2147483648, %v1996_v51  ;;  %vm2002_vm1 = vweird.f32 %v1996_v51  ;;  %v2006_v61 = vand.u32 2147483647, %v1996_v51 }
0x16ce   :  { %2572 = vpow2.f32 %v2329_v2 }
0x16cf   :  { %v2009_v63 = vor.u32 1.1754944e-38, %v2008_v59  ;;  %vm2007_vm5 = vcmp.eq.f32.partialorder %v2006_v61, 8.507059e+37 }
0x16d1   :  { %2058 = vrot.lane.b32.xlu1 %v1669_v48, %s2803_s21 }
0x16d3   :  { %v2571_v53 = vpop.eup %2570 }
0x16d4   :  { %v1998_v54 = vmul.f32 %v2571_v53, %v1996_v51  ;;  %vm2003_vm10 = vweird.f32 %v2571_v53  ;;  %v2573_v3 = vpop.eup %2572 }
0x16d5   :  { %vm2004_vm4 = vmor %vm2002_vm1, %vm2003_vm10  ;;  %v1249_v4 = vadd.f32 1.0, %v2573_v3 }
0x16d6   :  { %v1999_v55 = vsub.f32 1.0, %v1998_v54 }
0x16d7   :  { %2574 = vrcp.f32 %v1249_v4  ;;  %v1261_v13 = vand.u32 2147483648, %v1249_v4  ;;  %vm1255_vm8 = vweird.f32 %v1249_v4  ;;  %v1259_v42 = vand.u32 2147483647, %v1249_v4 }
0x16d8   :  { %v2000_v56 = vmul.f32 %v2571_v53, %v1999_v55 }
0x16d9   :  { %v1262_v17 = vor.u32 1.1754944e-38, %v1261_v13  ;;  %vm1260_vm9 = vcmp.eq.f32.partialorder %v1259_v42, 8.507059e+37 }
0x16da   :  { %v2001_v58 = vadd.f32 %v2571_v53, %v2000_v56 }
0x16dc   :  { %v2005_v62 = vsel %vm2004_vm4, %v2571_v53, %v2001_v58 }
0x16dd   :  { %v2010_v27 = vsel %vm2007_vm5, %v2009_v63, %v2005_v62  ;;  %v2575_v28 = vpop.eup %2574 }
0x16de   :  { %v1251_v5 = vmul.f32 %v2575_v28, %v1249_v4  ;;  %v2013_v6 = vmul.f32 %v2010_v27, %v3125_v16  ;;  %vm1256_vm6 = vweird.f32 %v2575_v28 }
0x16df   :  { %vm1257_vm7 = vmor %vm1255_vm8, %vm1256_vm6 }
0x16e0   :  { %v1252_v8 = vsub.f32 1.0, %v1251_v5 }
0x16e2   :  { %v1253_v10 = vmul.f32 %v2575_v28, %v1252_v8 }
0x16e4   :  { %v1254_v12 = vadd.f32 %v2575_v28, %v1253_v10 }
0x16e6   :  { %v1258_v15 = vsel %vm1257_vm7, %v2575_v28, %v1254_v12 }
0x16e7   :  { %v1263_v18 = vsel %vm1260_vm9, %v1262_v17, %v1258_v15 }
0x173b   :  { %v2016_v0 = vpop.permute.xlu1 %2015 }
0x173c   :  { %v2018_v1 = vmul.f32 %v2016_v0, %v2010_v27 }
0x173e   :  { %2020 = vrot.lane.b32.xlu0 %v2018_v1, %s2789_s29  ;;  %s2072_s29 = sshll.u32 %s2806_s6, 4  ;;  %s2073_s29 = int_to_ptr.vmem [resolvable:$true] %s2072_s29 }
0x1743   :  { %v2059_v34 = vpop.permute.xlu1 %2058 }
0x17b0   :  { %v2021_v7 = vpop.permute.xlu0 %2020 }
0x17b1   :  { %v2023_v52 = vadd.f32 %v2021_v7, %v2013_v6 }
0x17b3   :  { %2576 = vtanh.f32 %v2023_v52 }
0x17b9   :  { %v2577_v11 = vpop.eup %2576 }
0x17ba   :  { %2026 = vrot.lane.b32.xlu0 %v2577_v11, %s2800_s25 }
0x17c2   :  { %2054 = vrot.lane.b32.xlu0 %v1263_v18, %s2801_s17 }
0x182c   :  { %v2027_v16 = vpop.permute.xlu0 %2026 }
0x182d   :  { %v2029_v20 = vmul.f32 %v2027_v16, %v2010_v27 }
0x182f   :  { %v2348_v21 = vmul.f32 -1.442695, %v2029_v20 }
0x1831   :  { %2578 = vpow2.f32 %v2348_v21 }
0x1834   :  { %v2055_v25 = vpop.permute.xlu0 %2054 }
0x1835   :  { %v2061_v31 = vsel %vm150_vm3, %v2051_v30, %v2055_v25 }
0x1836   :  { %v2062_v35 = vsel %vm853_vm13, %v2061_v31, %v2059_v34 }
0x1837   :  { %v2579_v39 = vpop.eup %2578 }
0x1838   :  { %v2033_v46 = vadd.f32 1.0, %v2579_v39 }
0x183a   :  { %2580 = vrcp.f32 %v2033_v46  ;;  %v2045_v36 = vand.u32 2147483648, %v2033_v46  ;;  %v2043_v29 = vand.u32 2147483647, %v2033_v46  ;;  %vm2039_vm0 = vweird.f32 %v2033_v46 }
0x183c   :  { %v2046_v22 = vor.u32 1.1754944e-38, %v2045_v36  ;;  %vm2044_vm15 = vcmp.eq.f32.partialorder %v2043_v29, 8.507059e+37 }
0x1840   :  { %v2581_v14 = vpop.eup %2580 }
0x1841   :  { %v2035_v23 = vmul.f32 %v2581_v14, %v2033_v46  ;;  %vm2040_vm11 = vweird.f32 %v2581_v14 }
0x1842   :  { %vm2041_vm2 = vmor %vm2039_vm0, %vm2040_vm11 }
0x1843   :  { %v2036_v24 = vsub.f32 1.0, %v2035_v23 }
0x1845   :  { %v2037_v32 = vmul.f32 %v2581_v14, %v2036_v24 }
0x1847   :  { %v2038_v33 = vadd.f32 %v2581_v14, %v2037_v32 }
0x1849   :  { %v2042_v57 = vsel %vm2041_vm2, %v2581_v14, %v2038_v33 }
0x184a   :  { %v2047_v37 = vsel %vm2044_vm15, %v2046_v22, %v2042_v57 }
0x184b   :  { %v2064_v26 = vsel %vm2063_vm14, %v2062_v35, %v2047_v37 }
0x184c   :  { %2066 = vst.msk [vmem:[#allocation14] sm:$0x3] %vm2065_vm12, %v2064_v26 }
0x184d   :  { %2077 = dma.vmem_to_hbm [thread:$0]  %s2073_s29, 32, %s2075_s27, [#allocation4]  }
0x184e   :  { %2783 = dma.done.wait [#allocation4], 32  }
0x184f   :  { %2784 = vsyncadd [#allocation4], 4294967264 }
0x1850   :  { %2082 = vsyncpa [#allocation3], 1 }
0x1851   :  { %2083 = vsyncpa [#allocation6], 1 }
0x1852   :  { %2084 = vsyncpa [#allocation9], 1 }
0x1853   :  { %2085 = vsyncpa [#allocation12], 1 }
0x1854   :  { %2086 = vsyncpa [#allocation4], 1 }

</bundles_post_ra>
